<compile_context>
chip_gen: v5e
topology: v5e:2x2
jax: 0.10.0
libtpu: 0.0.40
codegen_flags: <defaults>
</compile_context>

<pallas_src>
import functools

import numpy as np
import jax
import jax.numpy as jnp
from jax.experimental import pallas as pl
from jax.experimental.pallas import tpu as pltpu


BN_EPS = 0.8  # nn.BatchNorm2d(out_filters, 0.8) -> eps=0.8


# ----------------------------- Pallas kernel --------------------------------

def _disc_fused_kernel(a1_ref, r1_ref, g1_ref, e1_ref,
                       r2_ref, g2_ref, e2_ref,
                       r3_ref, g3_ref, e3_ref,
                       wlin_ref, badv_ref, o_ref, *, batch, h_out3, slope):
    """Whole Discriminator_Conv forward, fully VMEM-resident."""

    def conv_block(a, r_ref, g_ref, e_ref):
        # Y = sum_i (R_i @ A) @ G_i   (stride-2, pad-2, 5x5 conv as matmuls)
        acc = jnp.dot(r_ref[0], a, preferred_element_type=jnp.float32)
        acc = jnp.dot(acc, g_ref[0], preferred_element_type=jnp.float32)
        for i in range(1, 5):
            band = jnp.dot(r_ref[i], a, preferred_element_type=jnp.float32)
            acc = acc + jnp.dot(band, g_ref[i], preferred_element_type=jnp.float32)
        y = acc + e_ref[0:1, :]                      # + conv bias (column-tiled)
        y = jnp.where(y >= 0, y, slope * y)          # LeakyReLU(0.2)
        return y * e_ref[1:2, :] + e_ref[2:3, :]     # eval-BN affine (1/0 if no BN)

    a = conv_block(a1_ref[...], r1_ref, g1_ref, e1_ref)    # [B*H1, W1*16]
    a = conv_block(a, r2_ref, g2_ref, e2_ref)               # [B*H2, W2*32]
    a = conv_block(a, r3_ref, g3_ref, e3_ref)                # [H3*B, W3*128] (rows: (ho, b))

    # Final Linear(128*H3*W3 -> 1): elementwise multiply with the rearranged
    # adv weights + row reduction (VPU/XLU only, no extra matmul / launch).
    s = jnp.sum(a * wlin_ref[...], axis=1, keepdims=True)   # [H3*B, 1]
    val = s[0:batch, :]
    for ho in range(1, h_out3):
        val = val + s[ho * batch:(ho + 1) * batch, :]
    o_ref[...] = val + badv_ref[...]                          # [B, 1]


# --------------------- trace-time operand construction ----------------------

def _make_row_select(batch, h_in, h_out, offset, batch_major=True):
    """R[i]: 0/1 matrix selecting input row (2*ho + i - offset) per batch.

    Out-of-range rows stay zero (this IS the conv's zero padding along H).
    Output row index is b*h_out+ho (batch_major) or ho*batch+b.
    """
    r = np.zeros((5, batch * h_out, batch * h_in), np.float32)
    for i in range(5):
        for b in range(batch):
            for ho in range(h_out):
                hin = 2 * ho + i - offset
                if 0 <= hin < h_in:
                    row = b * h_out + ho if batch_major else ho * batch + b
                    r[i, row, b * h_in + hin] = 1.0
    return jnp.asarray(r)


def _make_toeplitz_weights(w_oihw, w_in, w_out, offset):
    """G[i] in [w_in*Cin, w_out*Cout]: folds the 5-tap, stride-2, zero-padded
    width convolution for kernel row i into one matmul operand."""
    sel = np.zeros((w_in, w_out, 5), np.float32)
    for u in range(w_in):
        for wo in range(w_out):
            j = u + offset - 2 * wo
            if 0 <= j < 5:
                sel[u, wo, j] = 1.0
    c_out, c_in = w_oihw.shape[0], w_oihw.shape[1]
    g = jnp.einsum("uwj,ocij->iucwo", jnp.asarray(sel), w_oihw.astype(jnp.float32))
    return g.reshape(5, w_in * c_in, w_out * c_out)


def _make_epilogue(bias, scale, shift, w_out):
    """Pack (bias, scale, shift), each tiled to the (wo, co) column layout."""
    return jnp.stack([jnp.tile(bias, w_out),
                      jnp.tile(scale, w_out),
                      jnp.tile(shift, w_out)]).astype(jnp.float32)


def _conv_out(n):
    return (n + 2 * 2 - 5) // 2 + 1


# ------------------------------ model forward -------------------------------

@jax.jit
def discriminator_forward(img, params):
    B, C, H, W = img.shape
    H1, W1 = _conv_out(H), _conv_out(W)
    H2, W2 = _conv_out(H1), _conv_out(W1)
    H3, W3 = _conv_out(H2), _conv_out(W2)
    C1, C2, C3 = 16, 32, 128

    # Padded NHWC input, flattened to [B*(H+4), (W+4)*C] (the only activation
    # layout work done outside the kernel, on the tiny input image).
    a1 = jnp.transpose(img, (0, 2, 3, 1))
    a1 = jnp.pad(a1, ((0, 0), (2, 2), (2, 2), (0, 0)))
    a1 = a1.reshape(B * (H + 4), (W + 4) * C).astype(jnp.float32)

    # Constant row-selection matrices (shape-only; trace-time constants).
    r1 = _make_row_select(B, H + 4, H1, offset=0)
    r2 = _make_row_select(B, H1, H2, offset=2)
    r3 = _make_row_select(B, H2, H3, offset=2, batch_major=False)

    # Toeplitz-expanded conv weights (weight-sized XLA work).
    g1 = _make_toeplitz_weights(params["w1"], W + 4, W1, offset=0)
    g2 = _make_toeplitz_weights(params["w2"], W1, W2, offset=2)
    g3 = _make_toeplitz_weights(params["w3"], W2, W3, offset=2)

    # Packed bias / BN-scale / BN-shift epilogues.
    e1 = _make_epilogue(params["b1"], jnp.ones((C1,), jnp.float32),
                        jnp.zeros((C1,), jnp.float32), W1)
    s2 = params["g2"] / jnp.sqrt(params["v2"] + BN_EPS)
    e2 = _make_epilogue(params["b2"], s2, params["be2"] - params["m2"] * s2, W2)
    s3 = params["g3"] / jnp.sqrt(params["v3"] + BN_EPS)
    e3 = _make_epilogue(params["b3"], s3, params["be3"] - params["m3"] * s3, W3)

    # adv-layer weights rearranged from PyTorch NCHW-flatten order (c,h,w) to
    # the kernel's [(ho, b), (wo, co)] layout.
    wlin = params["w_adv"].reshape(C3, H3, W3).transpose(1, 2, 0).reshape(H3, W3 * C3)
    wlin = jnp.repeat(wlin, B, axis=0).astype(jnp.float32)
    badv = params["b_adv"].reshape(1, 1).astype(jnp.float32)

    kernel = functools.partial(_disc_fused_kernel, batch=B, h_out3=H3, slope=0.2)
    vmem = pl.BlockSpec(memory_space=pltpu.MemorySpace.VMEM)
    return pl.pallas_call(
        kernel,
        out_shape=jax.ShapeDtypeStruct((B, 1), jnp.float32),
        in_specs=[vmem] * 12,
        out_specs=vmem,
    )(a1, r1, g1, e1, r2, g2, e2, r3, g3, e3, wlin, badv)


# ------------------------- pure-JAX reference (check) -----------------------

def reference_forward(img, params):
    def conv(x, w, b):
        y = jax.lax.conv_general_dilated(
            x, w, (2, 2), ((2, 2), (2, 2)),
            dimension_numbers=("NCHW", "OIHW", "NCHW"))
        return y + b[None, :, None, None]

    def lrelu(x):
        return jnp.where(x >= 0, x, 0.2 * x)

    def bn(x, g, be, m, v):
        return ((x - m[None, :, None, None]) /
                jnp.sqrt(v[None, :, None, None] + BN_EPS)
                * g[None, :, None, None] + be[None, :, None, None])

    h = lrelu(conv(img, params["w1"], params["b1"]))
    h = bn(lrelu(conv(h, params["w2"], params["b2"])),
           params["g2"], params["be2"], params["m2"], params["v2"])
    h = bn(lrelu(conv(h, params["w3"], params["b3"])),
           params["g3"], params["be3"], params["m3"], params["v3"])
    flat = h.reshape(h.shape[0], -1)
    return flat @ params["w_adv"].T + params["b_adv"]


# ------------------------------ param init ----------------------------------

def init_params(key, channels, img_size):
    ds = (((img_size + 1) // 2 + 1) // 2 + 1) // 2
    ks = jax.random.split(key, 16)
    return {
        "w1": 0.05 * jax.random.normal(ks[0], (16, channels, 5, 5), jnp.float32),
        "b1": 0.05 * jax.random.normal(ks[1], (16,), jnp.float32),
        "w2": 0.05 * jax.random.normal(ks[2], (32, 16, 5, 5), jnp.float32),
        "b2": 0.05 * jax.random.normal(ks[3], (32,), jnp.float32),
        "g2": 1.0 + 0.05 * jax.random.normal(ks[4], (32,), jnp.float32),
        "be2": 0.05 * jax.random.normal(ks[5], (32,), jnp.float32),
        "m2": jnp.zeros((32,), jnp.float32),   # running_mean (PyTorch init)
        "v2": jnp.ones((32,), jnp.float32),    # running_var  (PyTorch init)
        "w3": 0.05 * jax.random.normal(ks[6], (128, 32, 5, 5), jnp.float32),
        "b3": 0.05 * jax.random.normal(ks[7], (128,), jnp.float32),
        "g3": 1.0 + 0.05 * jax.random.normal(ks[8], (128,), jnp.float32),
        "be3": 0.05 * jax.random.normal(ks[9], (128,), jnp.float32),
        "m3": jnp.zeros((128,), jnp.float32),
        "v3": jnp.ones((128,), jnp.float32),
        "w_adv": 0.05 * jax.random.normal(ks[10], (1, 128 * ds * ds), jnp.float32),
        "b_adv": 0.05 * jax.random.normal(ks[11], (1,), jnp.float32),
    }


# --------------------------------- main --------------------------------------

if __name__ == "__main__":
    B, C, IMG = 2, 4, 16   # opt.channels=4, opt.img_size=16
    key = jax.random.PRNGKey(0)
    k_img, k_par = jax.random.split(key)
    img = jax.random.normal(k_img, (B, C, IMG, IMG), jnp.float32)
    params = init_params(k_par, C, IMG)

    validity = jax.block_until_ready(discriminator_forward(img, params))
    assert validity.shape == (B, 1), validity.shape

    ref = jax.block_until_ready(reference_forward(img, params))
    np.testing.assert_allclose(np.asarray(validity), np.asarray(ref),
                               rtol=2e-2, atol=2e-2)

    print("KERNEL_OK")
</pallas_src>

<mosaic_0001>
module attributes {stable_mosaic.version = 11 : i64} {
  func.func @_disc_fused_kernel(%arg0: memref<40x80xf32, #tpu.memory_space<vmem>>, %arg1: memref<5x16x40xf32, #tpu.memory_space<vmem>>, %arg2: memref<5x80x128xf32, #tpu.memory_space<vmem>>, %arg3: memref<3x128xf32, #tpu.memory_space<vmem>>, %arg4: memref<5x8x16xf32, #tpu.memory_space<vmem>>, %arg5: memref<5x128x128xf32, #tpu.memory_space<vmem>>, %arg6: memref<3x128xf32, #tpu.memory_space<vmem>>, %arg7: memref<5x4x8xf32, #tpu.memory_space<vmem>>, %arg8: memref<5x128x256xf32, #tpu.memory_space<vmem>>, %arg9: memref<3x256xf32, #tpu.memory_space<vmem>>, %arg10: memref<4x256xf32, #tpu.memory_space<vmem>>, %arg11: memref<1x1xf32, #tpu.memory_space<vmem>>, %arg12: memref<2x1xf32, #tpu.memory_space<vmem>>) attributes {dimension_semantics = [], scalar_prefetch = 0 : i64, scratch_operands = 0 : i64, tpu.core_type = #tpu.core_type<tc>} {
    %c0 = arith.constant 0 : index
    %c0_0 = arith.constant 0 : index
    %0 = vector.load %arg0[%c0, %c0_0] : memref<40x80xf32, #tpu.memory_space<vmem>>, vector<40x80xf32>
    %c0_1 = arith.constant 0 : index
    %c0_2 = arith.constant 0 : index
    %c0_3 = arith.constant 0 : index
    %1 = vector.load %arg1[%c0_1, %c0_2, %c0_3] : memref<5x16x40xf32, #tpu.memory_space<vmem>>, vector<1x16x40xf32>
    %2 = vector.shape_cast %1 : vector<1x16x40xf32> to vector<16x40xf32>
    %cst = arith.constant dense<0.000000e+00> : vector<16x80xf32>
    %3 = tpu.matmul %2, %0, %cst {dimension_numbers = #tpu.dot_dimension_numbers<[1], [0], [0], [1], [0, 0, 1, 1], [], []>} : vector<16x40xf32>, vector<40x80xf32>, vector<16x80xf32> -> vector<16x80xf32>
    %c0_4 = arith.constant 0 : index
    %c0_5 = arith.constant 0 : index
    %c0_6 = arith.constant 0 : index
    %4 = vector.load %arg2[%c0_4, %c0_5, %c0_6] : memref<5x80x128xf32, #tpu.memory_space<vmem>>, vector<1x80x128xf32>
    %5 = vector.shape_cast %4 : vector<1x80x128xf32> to vector<80x128xf32>
    %cst_7 = arith.constant dense<0.000000e+00> : vector<16x128xf32>
    %6 = tpu.matmul %3, %5, %cst_7 {dimension_numbers = #tpu.dot_dimension_numbers<[1], [0], [0], [1], [0, 0, 1, 1], [], []>} : vector<16x80xf32>, vector<80x128xf32>, vector<16x128xf32> -> vector<16x128xf32>
    %c1 = arith.constant 1 : index
    %c0_8 = arith.constant 0 : index
    %c0_9 = arith.constant 0 : index
    %7 = vector.load %arg1[%c1, %c0_8, %c0_9] : memref<5x16x40xf32, #tpu.memory_space<vmem>>, vector<1x16x40xf32>
    %8 = vector.shape_cast %7 : vector<1x16x40xf32> to vector<16x40xf32>
    %cst_10 = arith.constant dense<0.000000e+00> : vector<16x80xf32>
    %9 = tpu.matmul %8, %0, %cst_10 {dimension_numbers = #tpu.dot_dimension_numbers<[1], [0], [0], [1], [0, 0, 1, 1], [], []>} : vector<16x40xf32>, vector<40x80xf32>, vector<16x80xf32> -> vector<16x80xf32>
    %c1_11 = arith.constant 1 : index
    %c0_12 = arith.constant 0 : index
    %c0_13 = arith.constant 0 : index
    %10 = vector.load %arg2[%c1_11, %c0_12, %c0_13] : memref<5x80x128xf32, #tpu.memory_space<vmem>>, vector<1x80x128xf32>
    %11 = vector.shape_cast %10 : vector<1x80x128xf32> to vector<80x128xf32>
    %cst_14 = arith.constant dense<0.000000e+00> : vector<16x128xf32>
    %12 = tpu.matmul %9, %11, %cst_14 {dimension_numbers = #tpu.dot_dimension_numbers<[1], [0], [0], [1], [0, 0, 1, 1], [], []>} : vector<16x80xf32>, vector<80x128xf32>, vector<16x128xf32> -> vector<16x128xf32>
    %13 = arith.addf %6, %12 : vector<16x128xf32>
    %c2 = arith.constant 2 : index
    %c0_15 = arith.constant 0 : index
    %c0_16 = arith.constant 0 : index
    %14 = vector.load %arg1[%c2, %c0_15, %c0_16] : memref<5x16x40xf32, #tpu.memory_space<vmem>>, vector<1x16x40xf32>
    %15 = vector.shape_cast %14 : vector<1x16x40xf32> to vector<16x40xf32>
    %cst_17 = arith.constant dense<0.000000e+00> : vector<16x80xf32>
    %16 = tpu.matmul %15, %0, %cst_17 {dimension_numbers = #tpu.dot_dimension_numbers<[1], [0], [0], [1], [0, 0, 1, 1], [], []>} : vector<16x40xf32>, vector<40x80xf32>, vector<16x80xf32> -> vector<16x80xf32>
    %c2_18 = arith.constant 2 : index
    %c0_19 = arith.constant 0 : index
    %c0_20 = arith.constant 0 : index
    %17 = vector.load %arg2[%c2_18, %c0_19, %c0_20] : memref<5x80x128xf32, #tpu.memory_space<vmem>>, vector<1x80x128xf32>
    %18 = vector.shape_cast %17 : vector<1x80x128xf32> to vector<80x128xf32>
    %cst_21 = arith.constant dense<0.000000e+00> : vector<16x128xf32>
    %19 = tpu.matmul %16, %18, %cst_21 {dimension_numbers = #tpu.dot_dimension_numbers<[1], [0], [0], [1], [0, 0, 1, 1], [], []>} : vector<16x80xf32>, vector<80x128xf32>, vector<16x128xf32> -> vector<16x128xf32>
    %20 = arith.addf %13, %19 : vector<16x128xf32>
    %c3 = arith.constant 3 : index
    %c0_22 = arith.constant 0 : index
    %c0_23 = arith.constant 0 : index
    %21 = vector.load %arg1[%c3, %c0_22, %c0_23] : memref<5x16x40xf32, #tpu.memory_space<vmem>>, vector<1x16x40xf32>
    %22 = vector.shape_cast %21 : vector<1x16x40xf32> to vector<16x40xf32>
    %cst_24 = arith.constant dense<0.000000e+00> : vector<16x80xf32>
    %23 = tpu.matmul %22, %0, %cst_24 {dimension_numbers = #tpu.dot_dimension_numbers<[1], [0], [0], [1], [0, 0, 1, 1], [], []>} : vector<16x40xf32>, vector<40x80xf32>, vector<16x80xf32> -> vector<16x80xf32>
    %c3_25 = arith.constant 3 : index
    %c0_26 = arith.constant 0 : index
    %c0_27 = arith.constant 0 : index
    %24 = vector.load %arg2[%c3_25, %c0_26, %c0_27] : memref<5x80x128xf32, #tpu.memory_space<vmem>>, vector<1x80x128xf32>
    %25 = vector.shape_cast %24 : vector<1x80x128xf32> to vector<80x128xf32>
    %cst_28 = arith.constant dense<0.000000e+00> : vector<16x128xf32>
    %26 = tpu.matmul %23, %25, %cst_28 {dimension_numbers = #tpu.dot_dimension_numbers<[1], [0], [0], [1], [0, 0, 1, 1], [], []>} : vector<16x80xf32>, vector<80x128xf32>, vector<16x128xf32> -> vector<16x128xf32>
    %27 = arith.addf %20, %26 : vector<16x128xf32>
    %c4 = arith.constant 4 : index
    %c0_29 = arith.constant 0 : index
    %c0_30 = arith.constant 0 : index
    %28 = vector.load %arg1[%c4, %c0_29, %c0_30] : memref<5x16x40xf32, #tpu.memory_space<vmem>>, vector<1x16x40xf32>
    %29 = vector.shape_cast %28 : vector<1x16x40xf32> to vector<16x40xf32>
    %cst_31 = arith.constant dense<0.000000e+00> : vector<16x80xf32>
    %30 = tpu.matmul %29, %0, %cst_31 {dimension_numbers = #tpu.dot_dimension_numbers<[1], [0], [0], [1], [0, 0, 1, 1], [], []>} : vector<16x40xf32>, vector<40x80xf32>, vector<16x80xf32> -> vector<16x80xf32>
    %c4_32 = arith.constant 4 : index
    %c0_33 = arith.constant 0 : index
    %c0_34 = arith.constant 0 : index
    %31 = vector.load %arg2[%c4_32, %c0_33, %c0_34] : memref<5x80x128xf32, #tpu.memory_space<vmem>>, vector<1x80x128xf32>
    %32 = vector.shape_cast %31 : vector<1x80x128xf32> to vector<80x128xf32>
    %cst_35 = arith.constant dense<0.000000e+00> : vector<16x128xf32>
    %33 = tpu.matmul %30, %32, %cst_35 {dimension_numbers = #tpu.dot_dimension_numbers<[1], [0], [0], [1], [0, 0, 1, 1], [], []>} : vector<16x80xf32>, vector<80x128xf32>, vector<16x128xf32> -> vector<16x128xf32>
    %34 = arith.addf %27, %33 : vector<16x128xf32>
    %c0_36 = arith.constant 0 : index
    %c0_37 = arith.constant 0 : index
    %35 = vector.load %arg3[%c0_36, %c0_37] : memref<3x128xf32, #tpu.memory_space<vmem>>, vector<1x128xf32>
    %36 = vector.broadcast %35 : vector<1x128xf32> to vector<16x128xf32>
    %37 = arith.addf %34, %36 : vector<16x128xf32>
    %cst_38 = arith.constant 0.000000e+00 : f32
    %38 = vector.broadcast %cst_38 : f32 to vector<16x128xf32>
    %39 = arith.cmpf oge, %37, %38 : vector<16x128xf32>
    %cst_39 = arith.constant 2.000000e-01 : f32
    %40 = vector.broadcast %cst_39 : f32 to vector<16x128xf32>
    %41 = arith.mulf %40, %37 : vector<16x128xf32>
    %42 = arith.select %39, %37, %41 : vector<16x128xi1>, vector<16x128xf32>
    %c1_40 = arith.constant 1 : index
    %c0_41 = arith.constant 0 : index
    %43 = vector.load %arg3[%c1_40, %c0_41] : memref<3x128xf32, #tpu.memory_space<vmem>>, vector<1x128xf32>
    %44 = vector.broadcast %43 : vector<1x128xf32> to vector<16x128xf32>
    %45 = arith.mulf %42, %44 : vector<16x128xf32>
    %c2_42 = arith.constant 2 : index
    %c0_43 = arith.constant 0 : index
    %46 = vector.load %arg3[%c2_42, %c0_43] : memref<3x128xf32, #tpu.memory_space<vmem>>, vector<1x128xf32>
    %47 = vector.broadcast %46 : vector<1x128xf32> to vector<16x128xf32>
    %48 = arith.addf %45, %47 : vector<16x128xf32>
    %c0_44 = arith.constant 0 : index
    %c0_45 = arith.constant 0 : index
    %c0_46 = arith.constant 0 : index
    %49 = vector.load %arg4[%c0_44, %c0_45, %c0_46] : memref<5x8x16xf32, #tpu.memory_space<vmem>>, vector<1x8x16xf32>
    %50 = vector.shape_cast %49 : vector<1x8x16xf32> to vector<8x16xf32>
    %cst_47 = arith.constant dense<0.000000e+00> : vector<8x128xf32>
    %51 = tpu.matmul %50, %48, %cst_47 {dimension_numbers = #tpu.dot_dimension_numbers<[1], [0], [0], [1], [0, 0, 1, 1], [], []>} : vector<8x16xf32>, vector<16x128xf32>, vector<8x128xf32> -> vector<8x128xf32>
    %c0_48 = arith.constant 0 : index
    %c0_49 = arith.constant 0 : index
    %c0_50 = arith.constant 0 : index
    %52 = vector.load %arg5[%c0_48, %c0_49, %c0_50] : memref<5x128x128xf32, #tpu.memory_space<vmem>>, vector<1x128x128xf32>
    %53 = vector.shape_cast %52 : vector<1x128x128xf32> to vector<128x128xf32>
    %cst_51 = arith.constant dense<0.000000e+00> : vector<8x128xf32>
    %54 = tpu.matmul %51, %53, %cst_51 {dimension_numbers = #tpu.dot_dimension_numbers<[1], [0], [0], [1], [0, 0, 1, 1], [], []>} : vector<8x128xf32>, vector<128x128xf32>, vector<8x128xf32> -> vector<8x128xf32>
    %c1_52 = arith.constant 1 : index
    %c0_53 = arith.constant 0 : index
    %c0_54 = arith.constant 0 : index
    %55 = vector.load %arg4[%c1_52, %c0_53, %c0_54] : memref<5x8x16xf32, #tpu.memory_space<vmem>>, vector<1x8x16xf32>
    %56 = vector.shape_cast %55 : vector<1x8x16xf32> to vector<8x16xf32>
    %cst_55 = arith.constant dense<0.000000e+00> : vector<8x128xf32>
    %57 = tpu.matmul %56, %48, %cst_55 {dimension_numbers = #tpu.dot_dimension_numbers<[1], [0], [0], [1], [0, 0, 1, 1], [], []>} : vector<8x16xf32>, vector<16x128xf32>, vector<8x128xf32> -> vector<8x128xf32>
    %c1_56 = arith.constant 1 : index
    %c0_57 = arith.constant 0 : index
    %c0_58 = arith.constant 0 : index
    %58 = vector.load %arg5[%c1_56, %c0_57, %c0_58] : memref<5x128x128xf32, #tpu.memory_space<vmem>>, vector<1x128x128xf32>
    %59 = vector.shape_cast %58 : vector<1x128x128xf32> to vector<128x128xf32>
    %cst_59 = arith.constant dense<0.000000e+00> : vector<8x128xf32>
    %60 = tpu.matmul %57, %59, %cst_59 {dimension_numbers = #tpu.dot_dimension_numbers<[1], [0], [0], [1], [0, 0, 1, 1], [], []>} : vector<8x128xf32>, vector<128x128xf32>, vector<8x128xf32> -> vector<8x128xf32>
    %61 = arith.addf %54, %60 : vector<8x128xf32>
    %c2_60 = arith.constant 2 : index
    %c0_61 = arith.constant 0 : index
    %c0_62 = arith.constant 0 : index
    %62 = vector.load %arg4[%c2_60, %c0_61, %c0_62] : memref<5x8x16xf32, #tpu.memory_space<vmem>>, vector<1x8x16xf32>
    %63 = vector.shape_cast %62 : vector<1x8x16xf32> to vector<8x16xf32>
    %cst_63 = arith.constant dense<0.000000e+00> : vector<8x128xf32>
    %64 = tpu.matmul %63, %48, %cst_63 {dimension_numbers = #tpu.dot_dimension_numbers<[1], [0], [0], [1], [0, 0, 1, 1], [], []>} : vector<8x16xf32>, vector<16x128xf32>, vector<8x128xf32> -> vector<8x128xf32>
    %c2_64 = arith.constant 2 : index
    %c0_65 = arith.constant 0 : index
    %c0_66 = arith.constant 0 : index
    %65 = vector.load %arg5[%c2_64, %c0_65, %c0_66] : memref<5x128x128xf32, #tpu.memory_space<vmem>>, vector<1x128x128xf32>
    %66 = vector.shape_cast %65 : vector<1x128x128xf32> to vector<128x128xf32>
    %cst_67 = arith.constant dense<0.000000e+00> : vector<8x128xf32>
    %67 = tpu.matmul %64, %66, %cst_67 {dimension_numbers = #tpu.dot_dimension_numbers<[1], [0], [0], [1], [0, 0, 1, 1], [], []>} : vector<8x128xf32>, vector<128x128xf32>, vector<8x128xf32> -> vector<8x128xf32>
    %68 = arith.addf %61, %67 : vector<8x128xf32>
    %c3_68 = arith.constant 3 : index
    %c0_69 = arith.constant 0 : index
    %c0_70 = arith.constant 0 : index
    %69 = vector.load %arg4[%c3_68, %c0_69, %c0_70] : memref<5x8x16xf32, #tpu.memory_space<vmem>>, vector<1x8x16xf32>
    %70 = vector.shape_cast %69 : vector<1x8x16xf32> to vector<8x16xf32>
    %cst_71 = arith.constant dense<0.000000e+00> : vector<8x128xf32>
    %71 = tpu.matmul %70, %48, %cst_71 {dimension_numbers = #tpu.dot_dimension_numbers<[1], [0], [0], [1], [0, 0, 1, 1], [], []>} : vector<8x16xf32>, vector<16x128xf32>, vector<8x128xf32> -> vector<8x128xf32>
    %c3_72 = arith.constant 3 : index
    %c0_73 = arith.constant 0 : index
    %c0_74 = arith.constant 0 : index
    %72 = vector.load %arg5[%c3_72, %c0_73, %c0_74] : memref<5x128x128xf32, #tpu.memory_space<vmem>>, vector<1x128x128xf32>
    %73 = vector.shape_cast %72 : vector<1x128x128xf32> to vector<128x128xf32>
    %cst_75 = arith.constant dense<0.000000e+00> : vector<8x128xf32>
    %74 = tpu.matmul %71, %73, %cst_75 {dimension_numbers = #tpu.dot_dimension_numbers<[1], [0], [0], [1], [0, 0, 1, 1], [], []>} : vector<8x128xf32>, vector<128x128xf32>, vector<8x128xf32> -> vector<8x128xf32>
    %75 = arith.addf %68, %74 : vector<8x128xf32>
    %c4_76 = arith.constant 4 : index
    %c0_77 = arith.constant 0 : index
    %c0_78 = arith.constant 0 : index
    %76 = vector.load %arg4[%c4_76, %c0_77, %c0_78] : memref<5x8x16xf32, #tpu.memory_space<vmem>>, vector<1x8x16xf32>
    %77 = vector.shape_cast %76 : vector<1x8x16xf32> to vector<8x16xf32>
    %cst_79 = arith.constant dense<0.000000e+00> : vector<8x128xf32>
    %78 = tpu.matmul %77, %48, %cst_79 {dimension_numbers = #tpu.dot_dimension_numbers<[1], [0], [0], [1], [0, 0, 1, 1], [], []>} : vector<8x16xf32>, vector<16x128xf32>, vector<8x128xf32> -> vector<8x128xf32>
    %c4_80 = arith.constant 4 : index
    %c0_81 = arith.constant 0 : index
    %c0_82 = arith.constant 0 : index
    %79 = vector.load %arg5[%c4_80, %c0_81, %c0_82] : memref<5x128x128xf32, #tpu.memory_space<vmem>>, vector<1x128x128xf32>
    %80 = vector.shape_cast %79 : vector<1x128x128xf32> to vector<128x128xf32>
    %cst_83 = arith.constant dense<0.000000e+00> : vector<8x128xf32>
    %81 = tpu.matmul %78, %80, %cst_83 {dimension_numbers = #tpu.dot_dimension_numbers<[1], [0], [0], [1], [0, 0, 1, 1], [], []>} : vector<8x128xf32>, vector<128x128xf32>, vector<8x128xf32> -> vector<8x128xf32>
    %82 = arith.addf %75, %81 : vector<8x128xf32>
    %c0_84 = arith.constant 0 : index
    %c0_85 = arith.constant 0 : index
    %83 = vector.load %arg6[%c0_84, %c0_85] : memref<3x128xf32, #tpu.memory_space<vmem>>, vector<1x128xf32>
    %84 = vector.broadcast %83 : vector<1x128xf32> to vector<8x128xf32>
    %85 = arith.addf %82, %84 : vector<8x128xf32>
    %cst_86 = arith.constant 0.000000e+00 : f32
    %86 = vector.broadcast %cst_86 : f32 to vector<8x128xf32>
    %87 = arith.cmpf oge, %85, %86 : vector<8x128xf32>
    %cst_87 = arith.constant 2.000000e-01 : f32
    %88 = vector.broadcast %cst_87 : f32 to vector<8x128xf32>
    %89 = arith.mulf %88, %85 : vector<8x128xf32>
    %90 = arith.select %87, %85, %89 : vector<8x128xi1>, vector<8x128xf32>
    %c1_88 = arith.constant 1 : index
    %c0_89 = arith.constant 0 : index
    %91 = vector.load %arg6[%c1_88, %c0_89] : memref<3x128xf32, #tpu.memory_space<vmem>>, vector<1x128xf32>
    %92 = vector.broadcast %91 : vector<1x128xf32> to vector<8x128xf32>
    %93 = arith.mulf %90, %92 : vector<8x128xf32>
    %c2_90 = arith.constant 2 : index
    %c0_91 = arith.constant 0 : index
    %94 = vector.load %arg6[%c2_90, %c0_91] : memref<3x128xf32, #tpu.memory_space<vmem>>, vector<1x128xf32>
    %95 = vector.broadcast %94 : vector<1x128xf32> to vector<8x128xf32>
    %96 = arith.addf %93, %95 : vector<8x128xf32>
    %c0_92 = arith.constant 0 : index
    %c0_93 = arith.constant 0 : index
    %c0_94 = arith.constant 0 : index
    %97 = vector.load %arg7[%c0_92, %c0_93, %c0_94] : memref<5x4x8xf32, #tpu.memory_space<vmem>>, vector<1x4x8xf32>
    %98 = vector.shape_cast %97 : vector<1x4x8xf32> to vector<4x8xf32>
    %cst_95 = arith.constant dense<0.000000e+00> : vector<4x128xf32>
    %99 = tpu.matmul %98, %96, %cst_95 {dimension_numbers = #tpu.dot_dimension_numbers<[1], [0], [0], [1], [0, 0, 1, 1], [], []>} : vector<4x8xf32>, vector<8x128xf32>, vector<4x128xf32> -> vector<4x128xf32>
    %c0_96 = arith.constant 0 : index
    %c0_97 = arith.constant 0 : index
    %c0_98 = arith.constant 0 : index
    %100 = vector.load %arg8[%c0_96, %c0_97, %c0_98] : memref<5x128x256xf32, #tpu.memory_space<vmem>>, vector<1x128x256xf32>
    %101 = vector.shape_cast %100 : vector<1x128x256xf32> to vector<128x256xf32>
    %cst_99 = arith.constant dense<0.000000e+00> : vector<4x256xf32>
    %102 = tpu.matmul %99, %101, %cst_99 {dimension_numbers = #tpu.dot_dimension_numbers<[1], [0], [0], [1], [0, 0, 1, 1], [], []>} : vector<4x128xf32>, vector<128x256xf32>, vector<4x256xf32> -> vector<4x256xf32>
    %c1_100 = arith.constant 1 : index
    %c0_101 = arith.constant 0 : index
    %c0_102 = arith.constant 0 : index
    %103 = vector.load %arg7[%c1_100, %c0_101, %c0_102] : memref<5x4x8xf32, #tpu.memory_space<vmem>>, vector<1x4x8xf32>
    %104 = vector.shape_cast %103 : vector<1x4x8xf32> to vector<4x8xf32>
    %cst_103 = arith.constant dense<0.000000e+00> : vector<4x128xf32>
    %105 = tpu.matmul %104, %96, %cst_103 {dimension_numbers = #tpu.dot_dimension_numbers<[1], [0], [0], [1], [0, 0, 1, 1], [], []>} : vector<4x8xf32>, vector<8x128xf32>, vector<4x128xf32> -> vector<4x128xf32>
    %c1_104 = arith.constant 1 : index
    %c0_105 = arith.constant 0 : index
    %c0_106 = arith.constant 0 : index
    %106 = vector.load %arg8[%c1_104, %c0_105, %c0_106] : memref<5x128x256xf32, #tpu.memory_space<vmem>>, vector<1x128x256xf32>
    %107 = vector.shape_cast %106 : vector<1x128x256xf32> to vector<128x256xf32>
    %cst_107 = arith.constant dense<0.000000e+00> : vector<4x256xf32>
    %108 = tpu.matmul %105, %107, %cst_107 {dimension_numbers = #tpu.dot_dimension_numbers<[1], [0], [0], [1], [0, 0, 1, 1], [], []>} : vector<4x128xf32>, vector<128x256xf32>, vector<4x256xf32> -> vector<4x256xf32>
    %109 = arith.addf %102, %108 : vector<4x256xf32>
    %c2_108 = arith.constant 2 : index
    %c0_109 = arith.constant 0 : index
    %c0_110 = arith.constant 0 : index
    %110 = vector.load %arg7[%c2_108, %c0_109, %c0_110] : memref<5x4x8xf32, #tpu.memory_space<vmem>>, vector<1x4x8xf32>
    %111 = vector.shape_cast %110 : vector<1x4x8xf32> to vector<4x8xf32>
    %cst_111 = arith.constant dense<0.000000e+00> : vector<4x128xf32>
    %112 = tpu.matmul %111, %96, %cst_111 {dimension_numbers = #tpu.dot_dimension_numbers<[1], [0], [0], [1], [0, 0, 1, 1], [], []>} : vector<4x8xf32>, vector<8x128xf32>, vector<4x128xf32> -> vector<4x128xf32>
    %c2_112 = arith.constant 2 : index
    %c0_113 = arith.constant 0 : index
    %c0_114 = arith.constant 0 : index
    %113 = vector.load %arg8[%c2_112, %c0_113, %c0_114] : memref<5x128x256xf32, #tpu.memory_space<vmem>>, vector<1x128x256xf32>
    %114 = vector.shape_cast %113 : vector<1x128x256xf32> to vector<128x256xf32>
    %cst_115 = arith.constant dense<0.000000e+00> : vector<4x256xf32>
    %115 = tpu.matmul %112, %114, %cst_115 {dimension_numbers = #tpu.dot_dimension_numbers<[1], [0], [0], [1], [0, 0, 1, 1], [], []>} : vector<4x128xf32>, vector<128x256xf32>, vector<4x256xf32> -> vector<4x256xf32>
    %116 = arith.addf %109, %115 : vector<4x256xf32>
    %c3_116 = arith.constant 3 : index
    %c0_117 = arith.constant 0 : index
    %c0_118 = arith.constant 0 : index
    %117 = vector.load %arg7[%c3_116, %c0_117, %c0_118] : memref<5x4x8xf32, #tpu.memory_space<vmem>>, vector<1x4x8xf32>
    %118 = vector.shape_cast %117 : vector<1x4x8xf32> to vector<4x8xf32>
    %cst_119 = arith.constant dense<0.000000e+00> : vector<4x128xf32>
    %119 = tpu.matmul %118, %96, %cst_119 {dimension_numbers = #tpu.dot_dimension_numbers<[1], [0], [0], [1], [0, 0, 1, 1], [], []>} : vector<4x8xf32>, vector<8x128xf32>, vector<4x128xf32> -> vector<4x128xf32>
    %c3_120 = arith.constant 3 : index
    %c0_121 = arith.constant 0 : index
    %c0_122 = arith.constant 0 : index
    %120 = vector.load %arg8[%c3_120, %c0_121, %c0_122] : memref<5x128x256xf32, #tpu.memory_space<vmem>>, vector<1x128x256xf32>
    %121 = vector.shape_cast %120 : vector<1x128x256xf32> to vector<128x256xf32>
    %cst_123 = arith.constant dense<0.000000e+00> : vector<4x256xf32>
    %122 = tpu.matmul %119, %121, %cst_123 {dimension_numbers = #tpu.dot_dimension_numbers<[1], [0], [0], [1], [0, 0, 1, 1], [], []>} : vector<4x128xf32>, vector<128x256xf32>, vector<4x256xf32> -> vector<4x256xf32>
    %123 = arith.addf %116, %122 : vector<4x256xf32>
    %c4_124 = arith.constant 4 : index
    %c0_125 = arith.constant 0 : index
    %c0_126 = arith.constant 0 : index
    %124 = vector.load %arg7[%c4_124, %c0_125, %c0_126] : memref<5x4x8xf32, #tpu.memory_space<vmem>>, vector<1x4x8xf32>
    %125 = vector.shape_cast %124 : vector<1x4x8xf32> to vector<4x8xf32>
    %cst_127 = arith.constant dense<0.000000e+00> : vector<4x128xf32>
    %126 = tpu.matmul %125, %96, %cst_127 {dimension_numbers = #tpu.dot_dimension_numbers<[1], [0], [0], [1], [0, 0, 1, 1], [], []>} : vector<4x8xf32>, vector<8x128xf32>, vector<4x128xf32> -> vector<4x128xf32>
    %c4_128 = arith.constant 4 : index
    %c0_129 = arith.constant 0 : index
    %c0_130 = arith.constant 0 : index
    %127 = vector.load %arg8[%c4_128, %c0_129, %c0_130] : memref<5x128x256xf32, #tpu.memory_space<vmem>>, vector<1x128x256xf32>
    %128 = vector.shape_cast %127 : vector<1x128x256xf32> to vector<128x256xf32>
    %cst_131 = arith.constant dense<0.000000e+00> : vector<4x256xf32>
    %129 = tpu.matmul %126, %128, %cst_131 {dimension_numbers = #tpu.dot_dimension_numbers<[1], [0], [0], [1], [0, 0, 1, 1], [], []>} : vector<4x128xf32>, vector<128x256xf32>, vector<4x256xf32> -> vector<4x256xf32>
    %130 = arith.addf %123, %129 : vector<4x256xf32>
    %c0_132 = arith.constant 0 : index
    %c0_133 = arith.constant 0 : index
    %131 = vector.load %arg9[%c0_132, %c0_133] : memref<3x256xf32, #tpu.memory_space<vmem>>, vector<1x256xf32>
    %132 = vector.broadcast %131 : vector<1x256xf32> to vector<4x256xf32>
    %133 = arith.addf %130, %132 : vector<4x256xf32>
    %cst_134 = arith.constant 0.000000e+00 : f32
    %134 = vector.broadcast %cst_134 : f32 to vector<4x256xf32>
    %135 = arith.cmpf oge, %133, %134 : vector<4x256xf32>
    %cst_135 = arith.constant 2.000000e-01 : f32
    %136 = vector.broadcast %cst_135 : f32 to vector<4x256xf32>
    %137 = arith.mulf %136, %133 : vector<4x256xf32>
    %138 = arith.select %135, %133, %137 : vector<4x256xi1>, vector<4x256xf32>
    %c1_136 = arith.constant 1 : index
    %c0_137 = arith.constant 0 : index
    %139 = vector.load %arg9[%c1_136, %c0_137] : memref<3x256xf32, #tpu.memory_space<vmem>>, vector<1x256xf32>
    %140 = vector.broadcast %139 : vector<1x256xf32> to vector<4x256xf32>
    %141 = arith.mulf %138, %140 : vector<4x256xf32>
    %c2_138 = arith.constant 2 : index
    %c0_139 = arith.constant 0 : index
    %142 = vector.load %arg9[%c2_138, %c0_139] : memref<3x256xf32, #tpu.memory_space<vmem>>, vector<1x256xf32>
    %143 = vector.broadcast %142 : vector<1x256xf32> to vector<4x256xf32>
    %144 = arith.addf %141, %143 : vector<4x256xf32>
    %c0_140 = arith.constant 0 : index
    %c0_141 = arith.constant 0 : index
    %145 = vector.load %arg10[%c0_140, %c0_141] : memref<4x256xf32, #tpu.memory_space<vmem>>, vector<4x256xf32>
    %146 = arith.mulf %144, %145 : vector<4x256xf32>
    %cst_142 = arith.constant dense<0.000000e+00> : vector<4xf32>
    %147 = vector.multi_reduction <add>, %146, %cst_142 [1] : vector<4x256xf32> to vector<4xf32>
    %148 = vector.shape_cast %147 : vector<4xf32> to vector<4x1xf32>
    %149 = vector.extract_strided_slice %148 {offsets = [0, 0], sizes = [2, 1], strides = [1, 1]} : vector<4x1xf32> to vector<2x1xf32>
    %150 = vector.extract_strided_slice %148 {offsets = [2, 0], sizes = [2, 1], strides = [1, 1]} : vector<4x1xf32> to vector<2x1xf32>
    %151 = arith.addf %149, %150 : vector<2x1xf32>
    %c0_143 = arith.constant 0 : index
    %c0_144 = arith.constant 0 : index
    %152 = vector.load %arg11[%c0_143, %c0_144] : memref<1x1xf32, #tpu.memory_space<vmem>>, vector<1x1xf32>
    %153 = vector.broadcast %152 : vector<1x1xf32> to vector<2x1xf32>
    %154 = arith.addf %151, %153 : vector<2x1xf32>
    %c0_145 = arith.constant 0 : index
    %c0_146 = arith.constant 0 : index
    %155 = vector.load %arg12[%c0_145, %c0_146] : memref<2x1xf32, #tpu.memory_space<vmem>>, vector<2x1xf32>
    tpu.vector_store %arg12[%c0_145, %c0_146], %154 {strides = array<i32>} : memref<2x1xf32, #tpu.memory_space<vmem>>, vector<2x1xf32>,
    return
  }
}

</mosaic_0001>

<bundles_post_ra>
// kernel: tile.51
= control target key start
LH: loop header
LB: loop body
LE: loop exit
PB: predicated region body
PF: predicated region fallthrough
CT: control target
= control target key end

     0   :  { %s22_s0 = inlined_call_operand.vmem [shape: f32[32], index: 0, kind: input, shape index: {}]   ;;  %s23_s1 = inlined_call_operand.vmem [shape: f32[4,32], index: 1, kind: output, shape index: {}]  }
   0x1   :  { %v4_v0 = vld [vmem:[%s22_s0] ss:$0 sm:$0xff] }
   0x2   :  { %5 = vst [vmem:[%s23_s1] sm:$0xf] %v4_v0 }

// kernel: tile.57
= control target key start
LH: loop header
LB: loop body
LE: loop exit
PB: predicated region body
PF: predicated region fallthrough
CT: control target
= control target key end

     0   :  { %s37_s8 = smov 32   ;;  %s38_s9 = smov 64   ;;  %vm7_vm0 = vcmask 261120   ;;  %vm13_vm1 = vcmask 1048320   ;;  %vm19_vm2 = vcmask 785920   ;;  %vm25_vm3 = vcmask 523520   ;;  %s55_s0 = inlined_call_operand.vmem [shape: f32[4,32], index: 0, kind: input, shape index: {}]   ;;  %s56_s1 = inlined_call_operand.vmem [shape: f32[1,128], index: 1, kind: output, shape index: {}]  }
   0x1   :  { %v4_v0 = vld [vmem:[%s55_s0] sm:$0xf]  ;;  %s36_s0 = smov 96  }
   0x2   :  { %5 = vst [vmem:[#allocation1] sm:$0xf] %v4_v0 }
   0x9   :  { %v10_v1 = vld [vmem:[#allocation1 + $0x3] sm:$0x1]   ;;  %v22_v2 = vld [vmem:[#allocation1 + $0x1] sm:$0x1]   ;;  %v16_v3 = vld [vmem:[#allocation1 + $0x2] sm:$0x1]  }
   0xa   :  { %11 = vrot.lane.b32.xlu0 %v10_v1, %s36_s0  ;;  %23 = vrot.lane.b32.xlu1 %v22_v2, %s37_s8  ;;  %v6_v4 = vld [vmem:[#allocation1] sm:$0x1]  }
   0xb   :  { %8 = vst.msk [vmem:[#allocation0] sm:$0x1] %vm7_vm0, %v6_v4  }
  0x12   :  { %17 = vrot.lane.b32.xlu0 %v16_v3, %s38_s9 }
  0x7c   :  { %v12_v5 = vpop.permute.xlu0 %11   ;;  %v24_v6 = vpop.permute.xlu1 %23  }
  0x7d   :  { %14 = vst.msk [vmem:[#allocation0] sm:$0x1] %vm13_vm1, %v12_v5  }
  0x84   :  { %v18_v7 = vpop.permute.xlu0 %17  }
  0x85   :  { %20 = vst.msk [vmem:[#allocation0] sm:$0x1] %vm19_vm2, %v18_v7  }
  0x86   :  { %26 = vst.msk [vmem:[#allocation0] sm:$0x1] %vm25_vm3, %v24_v6  }
  0x8d   :  { %v29_v8 = vld [vmem:[#allocation0] sm:$0x1] }
  0x8e   :  { %32 = vst [vmem:[%s56_s1] sm:$0x1] %v29_v8 }

// kernel: tile.47
= control target key start
LH: loop header
LB: loop body
LE: loop exit
PB: predicated region body
PF: predicated region fallthrough
CT: control target
= control target key end

     0   :  { %2 = vsyncpa [#allocation1], 0  ;;  %s48_s8 = smov [#allocation0]   ;;  %s65_s0 = inlined_call_operand.hbm [shape: f32[32], index: 0, kind: input, shape index: {}]   ;;  %s66_s1 = inlined_call_operand.vmem [shape: f32[4,32], index: 1, kind: output, shape index: {}]  }
   0x1   :  { %s8_s0 = sshll.u32 %s65_s0, 4  ;;  %s10_s9 = sshll.u32 %s48_s8, 4  ;;  %s9_s0 = int_to_ptr.hbm [resolvable:$true] %s8_s0  ;;  %s11_s9 = int_to_ptr.vmem [resolvable:$true] %s10_s9 }
   0x2   :  { %13 = dma.hbm_to_vmem [thread:$0]  %s9_s0, 16, %s11_s9, [#allocation1]  }
   0x3   :  { %46 = dma.done.wait [#allocation1], 16  }
   0x4   :  { %47 = vsyncadd [#allocation1], 4294967280  ;;  %v18_v0 = vld [vmem:[#allocation0] ss:$0 sm:$0xff] }
   0x5   :  { %19 = vst [vmem:[%s66_s1] sm:$0xf] %v18_v0 }
   0x6   :  { %20 = vsyncpa [#allocation1], 1 }

// kernel: tile.66
= control target key start
LH: loop header
LB: loop body
LE: loop exit
PB: predicated region body
PF: predicated region fallthrough
CT: control target
= control target key end

     0   :  { %s22_s0 = inlined_call_operand.vmem [shape: f32[128], index: 0, kind: input, shape index: {}]   ;;  %s23_s1 = inlined_call_operand.vmem [shape: f32[2,128], index: 1, kind: output, shape index: {}]  }
   0x1   :  { %v4_v0 = vld [vmem:[%s22_s0] ss:$0 sm:$0xff] }
   0x2   :  { %5 = vst [vmem:[%s23_s1] sm:$0x3] %v4_v0 }

// kernel: tile.62
= control target key start
LH: loop header
LB: loop body
LE: loop exit
PB: predicated region body
PF: predicated region fallthrough
CT: control target
= control target key end

     0   :  { %2 = vsyncpa [#allocation1], 0  ;;  %s48_s8 = smov [#allocation0]   ;;  %s65_s0 = inlined_call_operand.hbm [shape: f32[128], index: 0, kind: input, shape index: {}]   ;;  %s66_s1 = inlined_call_operand.vmem [shape: f32[2,128], index: 1, kind: output, shape index: {}]  }
   0x1   :  { %s8_s0 = sshll.u32 %s65_s0, 4  ;;  %s10_s9 = sshll.u32 %s48_s8, 4  ;;  %s9_s0 = int_to_ptr.hbm [resolvable:$true] %s8_s0  ;;  %s11_s9 = int_to_ptr.vmem [resolvable:$true] %s10_s9 }
   0x2   :  { %13 = dma.hbm_to_vmem [thread:$0]  %s9_s0, 16, %s11_s9, [#allocation1]  }
   0x3   :  { %46 = dma.done.wait [#allocation1], 16  }
   0x4   :  { %47 = vsyncadd [#allocation1], 4294967280  ;;  %v18_v0 = vld [vmem:[#allocation0] ss:$0 sm:$0xff] }
   0x5   :  { %19 = vst [vmem:[%s66_s1] sm:$0x3] %v18_v0 }
   0x6   :  { %20 = vsyncpa [#allocation1], 1 }

// kernel: tile.42
= control target key start
LH: loop header
LB: loop body
LE: loop exit
PB: predicated region body
PF: predicated region fallthrough
CT: control target
= control target key end

     0   :  { %s22_s0 = inlined_call_operand.vmem [shape: f32[16], index: 0, kind: input, shape index: {}]   ;;  %s23_s1 = inlined_call_operand.vmem [shape: f32[8,16], index: 1, kind: output, shape index: {}]  }
   0x1   :  { %v4_v0 = vld [vmem:[%s22_s0] ss:$0 sm:$0xff] }
   0x2   :  { %5 = vst [vmem:[%s23_s1] sm:$0xff] %v4_v0 }

// kernel: tile.43
= control target key start
LH: loop header
LB: loop body
LE: loop exit
PB: predicated region body
PF: predicated region fallthrough
CT: control target
= control target key end

     0   :  { %s67_s10 = smov 112   ;;  %s68_s11 = smov 80   ;;  %vm3_vm0 = vcmask 130048   ;;  %vm9_vm1 = vcmask 1048448   ;;  %vm15_vm2 = vcmask 917248   ;;  %vm21_vm3 = vcmask 786048   ;;  %s111_s0 = inlined_call_operand.vmem [shape: f32[8,16], index: 0, kind: input, shape index: {}]   ;;  %s112_s1 = inlined_call_operand.vmem [shape: f32[1,128], index: 1, kind: output, shape index: {}]  }
   0x1   :  { %v53_v0 = vld [vmem:[%s111_s0 + $0x7] sm:$0x1]   ;;  %v55_v1 = vld [vmem:[%s111_s0 + $0x5] sm:$0x1]   ;;  %v57_v2 = vld [vmem:[%s111_s0 + $0x3] sm:$0x1]  }
   0x2   :  { %7 = vrot.lane.b32.xlu0 %v53_v0, %s67_s10  ;;  %19 = vrot.lane.b32.xlu1 %v55_v1, %s68_s11  ;;  %s69_s14 = smov 48   ;;  %v54_v3 = vld [vmem:[%s111_s0 + $0x6] sm:$0x1]   ;;  %v56_v4 = vld [vmem:[%s111_s0 + $0x4] sm:$0x1]   ;;  %s70_s21 = smov 96  }
   0x3   :  { %31 = vrot.lane.b32.xlu2 %v57_v2, %s69_s14  ;;  %v58_v5 = vld [vmem:[%s111_s0 + $0x2] sm:$0x1]   ;;  %s71_s22 = smov 64   ;;  %s72_s23 = smov 32   ;;  %v59_v6 = vld [vmem:[%s111_s0 + $0x1] sm:$0x1]  }
   0x4   :  { %s73_s26 = smov 16   ;;  %v2_v7 = vld [vmem:[%s111_s0] sm:$0x1]   ;;  %vm27_vm4 = vcmask 654848   ;;  %vm33_vm5 = vcmask 523648   ;;  %vm39_vm6 = vcmask 392448  }
   0x5   :  { %4 = vst.msk [vmem:[#allocation0] sm:$0x1] %vm3_vm0, %v2_v7   ;;  %vm45_vm7 = vcmask 261248  }
   0xa   :  { %13 = vrot.lane.b32.xlu0 %v54_v3, %s70_s21  ;;  %25 = vrot.lane.b32.xlu1 %v56_v4, %s71_s22 }
   0xb   :  { %37 = vrot.lane.b32.xlu2 %v58_v5, %s72_s23 }
  0x12   :  { %43 = vrot.lane.b32.xlu0 %v59_v6, %s73_s26 }
  0x5d   :  { %v32_v8 = vpop.permute.xlu2 %31  }
  0x65   :  { %v38_v9 = vpop.permute.xlu2 %37  }
  0x74   :  { %v8_v10 = vpop.permute.xlu0 %7   ;;  %v20_v11 = vpop.permute.xlu1 %19  }
  0x75   :  { %10 = vst.msk [vmem:[#allocation0] sm:$0x1] %vm9_vm1, %v8_v10  }
  0x7c   :  { %v14_v12 = vpop.permute.xlu0 %13   ;;  %v26_v13 = vpop.permute.xlu1 %25  }
  0x7d   :  { %16 = vst.msk [vmem:[#allocation0] sm:$0x1] %vm15_vm2, %v14_v12  }
  0x7e   :  { %22 = vst.msk [vmem:[#allocation0] sm:$0x1] %vm21_vm3, %v20_v11  }
  0x7f   :  { %28 = vst.msk [vmem:[#allocation0] sm:$0x1] %vm27_vm4, %v26_v13  }
  0x80   :  { %34 = vst.msk [vmem:[#allocation0] sm:$0x1] %vm33_vm5, %v32_v8  }
  0x81   :  { %40 = vst.msk [vmem:[#allocation0] sm:$0x1] %vm39_vm6, %v38_v9  }
  0x84   :  { %v44_v14 = vpop.permute.xlu0 %43  }
  0x85   :  { %46 = vst.msk [vmem:[#allocation0] sm:$0x1] %vm45_vm7, %v44_v14  }
  0x8c   :  { %v49_v15 = vld [vmem:[#allocation0] sm:$0x1] }
  0x8d   :  { %52 = vst [vmem:[%s112_s1] sm:$0x1] %v49_v15 }

// kernel: discriminator_forward.1
= control target key start
LH: loop header
LB: loop body
LE: loop exit
PB: predicated region body
PF: predicated region fallthrough
CT: control target
= control target key end

     0   :  { %vm50_vm0 = vcmask 326656   ;;  %vm133_vm1 = vcmask 654336   ;;  %vm433_vm4 = vcmask 130048   ;;  %vm757_vm6 = vcmask 64512   ;;  %s2718_s0 = inlined_call_operand.vmem [shape: f32[40,80], index: 0, kind: input, shape index: {}]   ;;  %s2719_s2 = inlined_call_operand.vmem [shape: f32[5,80,128], index: 2, kind: input, shape index: {}]   ;;  %s2720_s1 = inlined_call_operand.vmem [shape: f32[5,16,40], index: 1, kind: input, shape index: {}]   ;;  %s2721_s5 = inlined_call_operand.vmem [shape: f32[5,128,128], index: 5, kind: input, shape index: {}]   ;;  %s2722_s3 = inlined_call_operand.vmem [shape: f32[3,128], index: 3, kind: input, shape index: {}]   ;;  %s2723_s4 = inlined_call_operand.vmem [shape: f32[5,8,16], index: 4, kind: input, shape index: {}]   ;;  %s2724_s6 = inlined_call_operand.vmem [shape: f32[3,128], index: 6, kind: input, shape index: {}]   ;;  %s2725_s8 = inlined_call_operand.vmem [shape: f32[5,128,256], index: 8, kind: input, shape index: {}]   ;;  %s2726_s7 = inlined_call_operand.vmem [shape: f32[5,4,8], index: 7, kind: input, shape index: {}]   ;;  %s2727_s10 = inlined_call_operand.vmem [shape: f32[4,256], index: 10, kind: input, shape index: {}]   ;;  %s2728_s11 = inlined_call_operand.<no memory space> [shape: f32[1,1], index: 11, kind: input, shape index: {}]   ;;  %s2729_s9 = inlined_call_operand.vmem [shape: f32[3,256], index: 9, kind: input, shape index: {}]   ;;  %s2730_s12 = inlined_call_operand.vmem [shape: f32[2,1], index: 12, kind: output, shape index: {}]  }
   0x1   :  { %v1668_v0 = vld [vmem:[%s2718_s0 + $0x20] sm:$0xff]  ;;  %v1673_v1 = vld [vmem:[%s2718_s0 + $0x18] sm:$0xff]  ;;  %v1680_v2 = vld [vmem:[%s2718_s0 + $0x10] sm:$0xff]  ;;  %vm1292_vm9 = vcmask 1043456   ;;  %vm1307_vm10 = vcmask 1024  }
   0x2   :  { %68 = vmatpush.msra.mxu0 %v1668_v0  ;;  %110 = vmatpush.msra.mxu1 %v1668_v0  ;;  %v1328_v3 = vld [vmem:[%s2719_s2 + $0x98] sm:$0xff]  ;;  %v1690_v4 = vld [vmem:[%s2718_s0 + $0x8] sm:$0xff]  ;;  %v1327_v6 = vld [vmem:[%s2719_s2 + $0x90] sm:$0xff] }
   0x3   :  { %146 = vmatpush.msra.mxu2 %v1328_v3  ;;  %v89_v5 = vld [vmem:[%s2719_s2 + $0x48] sm:$0xff]  ;;  %v88_v7 = vld [vmem:[%s2719_s2 + $0x40] sm:$0xff]  ;;  %v1315_v11 = vld [vmem:[%s2720_s1 + $0x10] sm:$0xff] }
   0x4   :  { %69 = vmatpush.msra.mxu0 %v1673_v1  ;;  %111 = vmatpush.msra.mxu1 %v1673_v1  ;;  %v1326_v8 = vld [vmem:[%s2719_s2 + $0x88] sm:$0xff]  ;;  %v1709_v9 = vld [vmem:[%s2718_s0] sm:$0xff]  ;;  %v87_v12 = vld [vmem:[%s2719_s2 + $0x38] sm:$0xff] }
   0x5   :  { %175 = vmatpush.msra.mxu3 %v89_v5  ;;  %147 = vmatpush.msra.mxu2 %v1327_v6  ;;  %v48_v10 = vld [vmem:[%s2720_s1] sm:$0xff]  ;;  %v1346_v14 = vld [vmem:[%s2719_s2 + $0xe8] sm:$0xff]  ;;  %v86_v15 = vld [vmem:[%s2719_s2 + $0x30] sm:$0xff] }
   0x6   :  { %70 = vmatpush.msra.mxu0 %v1680_v2  ;;  %112 = vmatpush.msra.mxu1 %v1680_v2  ;;  %v1325_v13 = vld [vmem:[%s2719_s2 + $0x80] sm:$0xff]  ;;  %v1324_v16 = vld [vmem:[%s2719_s2 + $0x78] sm:$0xff]  ;;  %v85_v17 = vld [vmem:[%s2719_s2 + $0x28] sm:$0xff] }
   0x7   :  { %176 = vmatpush.msra.mxu3 %v88_v7  ;;  %148 = vmatpush.msra.mxu2 %v1326_v8  ;;  %v1323_v18 = vld [vmem:[%s2719_s2 + $0x70] sm:$0xff]  ;;  %v84_v19 = vld [vmem:[%s2719_s2 + $0x20] sm:$0xff]  ;;  %v49_v20 = vld [vmem:[%s2720_s1 + $0x8] sm:$0xff] }
   0x8   :  { %71 = vmatpush.msra.mxu0 %v1690_v4  ;;  %113 = vmatpush.msra.mxu1 %v1690_v4  ;;  %v1316_v21 = vld [vmem:[%s2720_s1 + $0x18] sm:$0xff]  ;;  %v1322_v22 = vld [vmem:[%s2719_s2 + $0x68] sm:$0xff]  ;;  %v1321_v24 = vld [vmem:[%s2719_s2 + $0x60] sm:$0xff] }
   0x9   :  { %177 = vmatpush.msra.mxu3 %v87_v12  ;;  %149 = vmatpush.msra.mxu2 %v1325_v13  ;;  %v83_v23 = vld [vmem:[%s2719_s2 + $0x18] sm:$0xff]  ;;  %v82_v25 = vld [vmem:[%s2719_s2 + $0x10] sm:$0xff]  ;;  %v81_v27 = vld [vmem:[%s2719_s2 + $0x8] sm:$0xff] }
   0xa   :  { %72 = vmatpush.msra.mxu0 %v1709_v9  ;;  %114 = vmatpush.msra.mxu1 %v1709_v9  ;;  %v1320_v26 = vld [vmem:[%s2719_s2 + $0x58] sm:$0xff]  ;;  %v1333_v28 = vld [vmem:[%s2720_s1 + $0x20] sm:$0xff]  ;;  %v1334_v29 = vld [vmem:[%s2720_s1 + $0x28] sm:$0xff] }
   0xb   :  { %1313 = vmatmul.msk.f32.vlgmr.msra.gmra.mxu0 %vm50_vm0, %v48_v10  ;;  %1317 = vmatmul.msk.f32.vlgmr.msra.gmra.mxu1 %vm50_vm0, %v1315_v11  ;;  %v1319_v30 = vld [vmem:[%s2719_s2 + $0x50] sm:$0xff]  ;;  %v80_v31 = vld [vmem:[%s2719_s2] sm:$0xff]  ;;  %v1344_v33 = vld [vmem:[%s2719_s2 + $0xd8] sm:$0xff] }
   0xc   :  { %212 = vmatpush.msrb.mxu0 %v1668_v0  ;;  %247 = vmatpush.msrb.mxu1 %v1346_v14  ;;  %v1345_v32 = vld [vmem:[%s2719_s2 + $0xe0] sm:$0xff]  ;;  %v1343_v34 = vld [vmem:[%s2719_s2 + $0xd0] sm:$0xff]  ;;  %v1342_v35 = vld [vmem:[%s2719_s2 + $0xc8] sm:$0xff] }
   0xd   :  { %178 = vmatpush.msra.mxu3 %v86_v15  ;;  %150 = vmatpush.msra.mxu2 %v1324_v16  ;;  %v1341_v36 = vld [vmem:[%s2719_s2 + $0xc0] sm:$0xff]  ;;  %v1340_v37 = vld [vmem:[%s2719_s2 + $0xb8] sm:$0xff]  ;;  %v1339_v38 = vld [vmem:[%s2719_s2 + $0xb0] sm:$0xff] }
   0xe   :  { %213 = vmatpush.msrb.mxu0 %v1673_v1  ;;  %248 = vmatpush.msrb.mxu1 %v1345_v32  ;;  %v1338_v39 = vld [vmem:[%s2719_s2 + $0xa8] sm:$0xff]  ;;  %v1337_v40 = vld [vmem:[%s2719_s2 + $0xa0] sm:$0xff]  ;;  %v1362_v42 = vld [vmem:[%s2719_s2 + $0x138] sm:$0xff] }
   0xf   :  { %179 = vmatpush.msra.mxu3 %v85_v17  ;;  %151 = vmatpush.msra.mxu2 %v1323_v18  ;;  %v1365_v41 = vld [vmem:[%s2720_s1 + $0x40] sm:$0xff]  ;;  %v1366_v43 = vld [vmem:[%s2720_s1 + $0x48] sm:$0xff]  ;;  %v1349_v48 = vld [vmem:[%s2720_s1 + $0x30] sm:$0xff] }
  0x10   :  { %214 = vmatpush.msrb.mxu0 %v1680_v2  ;;  %249 = vmatpush.msrb.mxu1 %v1344_v33  ;;  %v1350_v50 = vld [vmem:[%s2720_s1 + $0x38] sm:$0xff]  ;;  %v1361_v52 = vld [vmem:[%s2719_s2 + $0x130] sm:$0xff]  ;;  %v1360_v53 = vld [vmem:[%s2719_s2 + $0x128] sm:$0xff] }
  0x11   :  { %180 = vmatpush.msra.mxu3 %v84_v19  ;;  %152 = vmatpush.msra.mxu2 %v1322_v22  ;;  %v1359_v54 = vld [vmem:[%s2719_s2 + $0x120] sm:$0xff]  ;;  %v1378_v55 = vld [vmem:[%s2719_s2 + $0x188] sm:$0xff]  ;;  %v1358_v56 = vld [vmem:[%s2719_s2 + $0x118] sm:$0xff] }
  0x12   :  { %215 = vmatpush.msrb.mxu0 %v1690_v4  ;;  %250 = vmatpush.msrb.mxu1 %v1343_v34  ;;  %v1357_v57 = vld [vmem:[%s2719_s2 + $0x110] sm:$0xff]  ;;  %v1377_v58 = vld [vmem:[%s2719_s2 + $0x180] sm:$0xff]  ;;  %v1356_v59 = vld [vmem:[%s2719_s2 + $0x108] sm:$0xff] }
  0x13   :  { %1314 = vmatmul.msk.f32.gmra.mxu0 %vm50_vm0, %v49_v20  ;;  %1318 = vmatmul.msk.f32.gmra.mxu1 %vm50_vm0, %v1316_v21  ;;  %v1376_v60 = vld [vmem:[%s2719_s2 + $0x178] sm:$0xff]  ;;  %v1355_v61 = vld [vmem:[%s2719_s2 + $0x100] sm:$0xff]  ;;  %v1375_v62 = vld [vmem:[%s2719_s2 + $0x170] sm:$0xff] }
  0x14   :  { %216 = vmatpush.msrb.mxu0 %v1709_v9  ;;  %181 = vmatpush.msra.mxu3 %v83_v23  ;;  %v1354_v63 = vld [vmem:[%s2719_s2 + $0xf8] sm:$0xff]  ;;  %v1370_v5 = vld [vmem:[%s2719_s2 + $0x148] sm:$0xff]  ;;  %v1369_v6 = vld [vmem:[%s2719_s2 + $0x140] sm:$0xff] }
  0x15   :  { %153 = vmatpush.msra.mxu2 %v1321_v24  ;;  %251 = vmatpush.msrb.mxu1 %v1342_v35  ;;  %v1372_v3 = vld [vmem:[%s2719_s2 + $0x158] sm:$0xff]  ;;  %v1397_v10 = vld [vmem:[%s2721_s5 + $0xe8] sm:$0xff]  ;;  %v1396_v11 = vld [vmem:[%s2721_s5 + $0xe0] sm:$0xff] }
  0x16   :  { %360 = vmatpush.msra.mxu0 %v1668_v0  ;;  %182 = vmatpush.msra.mxu3 %v82_v25  ;;  %v1399_v8 = vld [vmem:[%s2721_s5 + $0xf8] sm:$0xff]  ;;  %v1394_v18 = vld [vmem:[%s2721_s5 + $0xd0] sm:$0xff]  ;;  %v1393_v19 = vld [vmem:[%s2721_s5 + $0xc8] sm:$0xff] }
  0x17   :  { %154 = vmatpush.msra.mxu2 %v1320_v26  ;;  %252 = vmatpush.msrb.mxu1 %v1341_v36  ;;  %v1395_v12 = vld [vmem:[%s2721_s5 + $0xd8] sm:$0xff]  ;;  %v1392_v20 = vld [vmem:[%s2721_s5 + $0xc0] sm:$0xff]  ;;  %v1390_v22 = vld [vmem:[%s2721_s5 + $0xb0] sm:$0xff] }
  0x18   :  { %361 = vmatpush.msra.mxu0 %v1673_v1  ;;  %183 = vmatpush.msra.mxu3 %v81_v27  ;;  %v1391_v21 = vld [vmem:[%s2721_s5 + $0xb8] sm:$0xff]  ;;  %v1389_v23 = vld [vmem:[%s2721_s5 + $0xa8] sm:$0xff]  ;;  %v1388_v25 = vld [vmem:[%s2721_s5 + $0xa0] sm:$0xff] }
  0x19   :  { %155 = vmatpush.msra.mxu2 %v1319_v30  ;;  %253 = vmatpush.msrb.mxu1 %v1340_v37  ;;  %v1387_v27 = vld [vmem:[%s2721_s5 + $0x98] sm:$0xff]  ;;  %v1384_v30 = vld [vmem:[%s2721_s5 + $0x80] sm:$0xff] }
  0x1a   :  { %362 = vmatpush.msra.mxu0 %v1680_v2  ;;  %184 = vmatpush.msra.mxu3 %v80_v31 }
  0x1b   :  { %1335 = vmatmul.msk.f32.vlgmr.msrb.gmra.mxu0 %vm50_vm0, %v1333_v28  ;;  %286 = vmatpush.msrb.mxu2 %v1668_v0  ;;  %v1374_v0 = vld [vmem:[%s2719_s2 + $0x168] sm:$0xff]  ;;  %v1386_v28 = vld [vmem:[%s2721_s5 + $0x90] sm:$0xff] }
  0x1c   :  { %363 = vmatpush.msra.mxu0 %v1690_v4  ;;  %254 = vmatpush.msrb.mxu1 %v1339_v38 }
  0x1d   :  { %287 = vmatpush.msrb.mxu2 %v1673_v1  ;;  %321 = vmatpush.msrb.mxu3 %v1362_v42  ;;  %v1353_v1 = vld [vmem:[%s2719_s2 + $0xf0] sm:$0xff] }
  0x1e   :  { %364 = vmatpush.msra.mxu0 %v1709_v9  ;;  %255 = vmatpush.msrb.mxu1 %v1338_v39  ;;  %v1593_v39 = vld [vmem:[%s2722_s3] ss:$0 sm:$0xff] }
  0x1f   :  { %288 = vmatpush.msrb.mxu2 %v1680_v2  ;;  %322 = vmatpush.msrb.mxu3 %v1361_v52  ;;  %v1373_v2 = vld [vmem:[%s2719_s2 + $0x160] sm:$0xff] }
  0x20   :  { %256 = vmatpush.msrb.mxu1 %v1337_v40  ;;  %515 = vmatpush.msrb.mxu0 %v1399_v8  ;;  %v1382_v8 = vld [vmem:[%s2723_s4 + $0x8] sm:$0xff] }
  0x21   :  { %289 = vmatpush.msrb.mxu2 %v1690_v4  ;;  %323 = vmatpush.msrb.mxu3 %v1360_v53  ;;  %v1371_v4 = vld [vmem:[%s2719_s2 + $0x150] sm:$0xff]  ;;  %v472_v53 = vld [vmem:[%s2721_s5 + $0x78] sm:$0xff] }
  0x22   :  { %395 = vmatpush.msra.mxu1 %v1378_v55 }
  0x23   :  { %1336 = vmatmul.msk.f32.gmra.mxu0 %vm50_vm0, %v1334_v29  ;;  %290 = vmatpush.msrb.mxu2 %v1709_v9  ;;  %v1398_v9 = vld [vmem:[%s2721_s5 + $0xf0] sm:$0xff]  ;;  %v1385_v29 = vld [vmem:[%s2721_s5 + $0x88] sm:$0xff] }
  0x24   :  { %324 = vmatpush.msrb.mxu3 %v1359_v54  ;;  %396 = vmatpush.msra.mxu1 %v1377_v58  ;;  %v471_v54 = vld [vmem:[%s2721_s5 + $0x70] sm:$0xff]  ;;  %v1417_v58 = vld [vmem:[%s2721_s5 + $0x178] sm:$0xff] }
  0x25   :  { %516 = vmatpush.msrb.mxu0 %v1398_v9  ;;  %v465_v9 = vld [vmem:[%s2721_s5 + $0x40] sm:$0xff] }
  0x26   :  { %325 = vmatpush.msrb.mxu3 %v1358_v56  ;;  %397 = vmatpush.msra.mxu1 %v1376_v60  ;;  %v1595_v56 = vld [vmem:[%s2722_s3 + $0x2] ss:$0 sm:$0xff]  ;;  %v470_v60 = vld [vmem:[%s2721_s5 + $0x68] sm:$0xff] }
  0x27   :  { %517 = vmatpush.msrb.mxu0 %v1397_v10  ;;  %v1411_v10 = vld [vmem:[%s2721_s5 + $0x148] sm:$0xff] }
  0x28   :  { %326 = vmatpush.msrb.mxu3 %v1357_v57  ;;  %398 = vmatpush.msra.mxu1 %v1375_v62 }
  0x29   :  { %518 = vmatpush.msrb.mxu0 %v1396_v11  ;;  %v464_v11 = vld [vmem:[%s2721_s5 + $0x38] sm:$0xff] }
  0x2a   :  { %327 = vmatpush.msrb.mxu3 %v1356_v59  ;;  %399 = vmatpush.msra.mxu1 %v1374_v0  ;;  %v469_v0 = vld [vmem:[%s2721_s5 + $0x60] sm:$0xff] }
  0x2b   :  { %1367 = vmatmul.msk.f32.vlgmr.msra.gmra.mxu0 %vm50_vm0, %v1365_v41 }
  0x2c   :  { %328 = vmatpush.msrb.mxu3 %v1355_v61  ;;  %400 = vmatpush.msra.mxu1 %v1373_v2  ;;  %v1416_v61 = vld [vmem:[%s2721_s5 + $0x170] sm:$0xff]  ;;  %v468_v2 = vld [vmem:[%s2721_s5 + $0x58] sm:$0xff] }
  0x2d   :  { %519 = vmatpush.msrb.mxu0 %v1395_v12  ;;  %v463_v12 = vld [vmem:[%s2721_s5 + $0x30] sm:$0xff] }
  0x2e   :  { %329 = vmatpush.msrb.mxu3 %v1354_v63  ;;  %401 = vmatpush.msra.mxu1 %v1372_v3  ;;  %v432_v63 = vld [vmem:[%s2723_s4] sm:$0xff] }
  0x2f   :  { %520 = vmatpush.msrb.mxu0 %v1394_v18  ;;  %v1414_v3 = vld [vmem:[%s2721_s5 + $0x160] sm:$0xff]  ;;  %v1433_v18 = vld [vmem:[%s2721_s5 + $0x1e8] sm:$0xff] }
  0x30   :  { %330 = vmatpush.msrb.mxu3 %v1353_v1  ;;  %402 = vmatpush.msra.mxu1 %v1371_v4  ;;  %v1415_v1 = vld [vmem:[%s2721_s5 + $0x168] sm:$0xff]  ;;  %v467_v4 = vld [vmem:[%s2721_s5 + $0x50] sm:$0xff] }
  0x31   :  { %521 = vmatpush.msrb.mxu0 %v1393_v19  ;;  %v1418_v19 = vld [vmem:[%s2723_s4 + $0x18] sm:$0xff] }
  0x32   :  { %403 = vmatpush.msra.mxu1 %v1370_v5  ;;  %v1413_v5 = vld [vmem:[%s2721_s5 + $0x158] sm:$0xff] }
  0x33   :  { %1368 = vmatmul.msk.f32.gmra.mxu0 %vm50_vm0, %v1366_v43 }
  0x34   :  { %404 = vmatpush.msra.mxu1 %v1369_v6  ;;  %522 = vmatpush.msrb.mxu0 %v1392_v20  ;;  %v466_v6 = vld [vmem:[%s2721_s5 + $0x48] sm:$0xff]  ;;  %v460_v20 = vld [vmem:[%s2721_s5 + $0x18] sm:$0xff] }
  0x36   :  { %523 = vmatpush.msrb.mxu0 %v1391_v21  ;;  %v459_v21 = vld [vmem:[%s2721_s5 + $0x10] sm:$0xff] }
  0x38   :  { %524 = vmatpush.msrb.mxu0 %v1390_v22  ;;  %v458_v22 = vld [vmem:[%s2721_s5 + $0x8] sm:$0xff] }
  0x3a   :  { %525 = vmatpush.msrb.mxu0 %v1389_v23  ;;  %v1410_v23 = vld [vmem:[%s2721_s5 + $0x140] sm:$0xff] }
  0x3c   :  { %526 = vmatpush.msrb.mxu0 %v1388_v25  ;;  %v1409_v25 = vld [vmem:[%s2721_s5 + $0x138] sm:$0xff] }
  0x3e   :  { %527 = vmatpush.msrb.mxu0 %v1387_v27  ;;  %v1408_v27 = vld [vmem:[%s2721_s5 + $0x130] sm:$0xff] }
  0x40   :  { %528 = vmatpush.msrb.mxu0 %v1386_v28  ;;  %v1430_v28 = vld [vmem:[%s2721_s5 + $0x1d0] sm:$0xff] }
  0x42   :  { %529 = vmatpush.msrb.mxu0 %v1385_v29  ;;  %v457_v29 = vld [vmem:[%s2721_s5] sm:$0xff] }
  0x44   :  { %530 = vmatpush.msrb.mxu0 %v1384_v30  ;;  %v1407_v30 = vld [vmem:[%s2721_s5 + $0x128] sm:$0xff] }
  0x88   :  { %v74_v44 = vpop.f32.mrf.mxu0  ;;  %v116_v45 = vpop.f32.mrf.mxu1 }
  0x89   :  { %1329 = vmatmul.msk.f32.vlgmr.msra.gmra.mxu2 %vm133_vm1, %v116_v45  ;;  %1331 = vmatmul.msk.f32.vlgmr.msra.gmra.mxu3 %vm133_vm1, %v74_v44 }
  0x8a   :  { %597 = vmatpush.msra.mxu3 %v1417_v58  ;;  %v1445_v58 = vld [vmem:[%s2721_s5 + $0x238] sm:$0xff] }
  0x8c   :  { %598 = vmatpush.msra.mxu3 %v1416_v61  ;;  %v1443_v61 = vld [vmem:[%s2721_s5 + $0x228] sm:$0xff] }
  0x8e   :  { %599 = vmatpush.msra.mxu3 %v1415_v1  ;;  %v1439_v1 = vld [vmem:[%s2721_s5 + $0x208] sm:$0xff] }
  0x90   :  { %v77_v46 = vpop.f32.mrf.mxu0  ;;  %v119_v47 = vpop.f32.mrf.mxu1  ;;  %600 = vmatpush.msra.mxu3 %v1414_v3  ;;  %v1487_v3 = vld [vmem:[%s2725_s8 + $0x1f0] sm:$0xff] }
  0x91   :  { %1330 = vmatmul.msk.f32.gmra.mxu2 %vm133_vm1, %v119_v47  ;;  %1332 = vmatmul.msk.f32.gmra.mxu3 %vm133_vm1, %v77_v46 }
  0x92   :  { %601 = vmatpush.msra.mxu3 %v1413_v5  ;;  %v1485_v5 = vld [vmem:[%s2725_s8 + $0x1e0] sm:$0xff] }
  0x98   :  { %v218_v49 = vpop.f32.mrf.mxu0 }
  0x99   :  { %1347 = vmatmul.msk.f32.vlgmr.msrb.gmra.mxu1 %vm133_vm1, %v218_v49  ;;  %1351 = vmatmul.msk.f32.vlgmr.msrb.gmra.mxu2 %vm50_vm0, %v1349_v48  ;;  %v1594_v49 = vld [vmem:[%s2722_s3 + $0x1] ss:$0 sm:$0xff] }
  0x9a   :  { %535 = vmatpush.msrb.mxu1 %v472_v53  ;;  %v1449_v53 = vld [vmem:[%s2721_s5 + $0x258] sm:$0xff] }
  0x9c   :  { %536 = vmatpush.msrb.mxu1 %v471_v54 }
  0x9e   :  { %537 = vmatpush.msrb.mxu1 %v470_v60  ;;  %v1444_v60 = vld [vmem:[%s2721_s5 + $0x230] sm:$0xff] }
  0xa0   :  { %v221_v51 = vpop.f32.mrf.mxu0  ;;  %538 = vmatpush.msrb.mxu1 %v469_v0  ;;  %v1440_v0 = vld [vmem:[%s2721_s5 + $0x210] sm:$0xff] }
  0xa1   :  { %1348 = vmatmul.msk.f32.gmra.mxu1 %vm133_vm1, %v221_v51  ;;  %1352 = vmatmul.msk.f32.gmra.mxu2 %vm50_vm0, %v1350_v50 }
  0xa2   :  { %539 = vmatpush.msrb.mxu1 %v468_v2  ;;  %v1438_v2 = vld [vmem:[%s2721_s5 + $0x200] sm:$0xff] }
  0xa4   :  { %540 = vmatpush.msrb.mxu1 %v467_v4  ;;  %v811_v4 = vld [vmem:[%s2725_s8 + $0xf0] sm:$0xff] }
  0xa6   :  { %541 = vmatpush.msrb.mxu1 %v466_v6  ;;  %v809_v6 = vld [vmem:[%s2725_s8 + $0xe0] sm:$0xff] }
  0xa8   :  { %v366_v7 = vpop.f32.mrf.mxu0  ;;  %542 = vmatpush.msrb.mxu1 %v465_v9  ;;  %v1481_v9 = vld [vmem:[%s2725_s8 + $0x1c0] sm:$0xff] }
  0xa9   :  { %1379 = vmatmul.msk.f32.vlgmr.msra.gmra.mxu1 %vm133_vm1, %v366_v7  ;;  %v1412_v7 = vld [vmem:[%s2721_s5 + $0x150] sm:$0xff] }
  0xaa   :  { %602 = vmatpush.msra.mxu3 %v1412_v7  ;;  %543 = vmatpush.msrb.mxu1 %v464_v11  ;;  %v1483_v7 = vld [vmem:[%s2725_s8 + $0x1d0] sm:$0xff] }
  0xab   :  { %v1479_v11 = vld [vmem:[%s2725_s8 + $0x1b0] sm:$0xff] }
  0xac   :  { %603 = vmatpush.msra.mxu3 %v1411_v10  ;;  %544 = vmatpush.msrb.mxu1 %v463_v12  ;;  %v805_v10 = vld [vmem:[%s2725_s8 + $0xc0] sm:$0xff]  ;;  %v803_v12 = vld [vmem:[%s2725_s8 + $0xb0] sm:$0xff] }
  0xae   :  { %604 = vmatpush.msra.mxu3 %v1410_v23  ;;  %v793_v23 = vld [vmem:[%s2725_s8 + $0x60] sm:$0xff] }
  0xb0   :  { %v369_v14 = vpop.f32.mrf.mxu0  ;;  %605 = vmatpush.msra.mxu3 %v1409_v25  ;;  %v1467_v25 = vld [vmem:[%s2725_s8 + $0x150] sm:$0xff] }
  0xb1   :  { %1380 = vmatmul.msk.f32.gmra.mxu1 %vm133_vm1, %v369_v14  ;;  %v1400_v14 = vld [vmem:[%s2723_s4 + $0x10] sm:$0xff] }
  0xb2   :  { %606 = vmatpush.msra.mxu3 %v1408_v27  ;;  %v1465_v27 = vld [vmem:[%s2725_s8 + $0x140] sm:$0xff] }
  0xb4   :  { %607 = vmatpush.msra.mxu3 %v1407_v30  ;;  %v787_v30 = vld [vmem:[%s2725_s8 + $0x30] sm:$0xff] }
 0x10c   :  { %v157_v13 = vpop.f32.mrf.mxu2  ;;  %v186_v26 = vpop.f32.mrf.mxu3 }
 0x10d   :  { %v187_v33 = vadd.f32 %v186_v26, %v157_v13  ;;  %v462_v13 = vld [vmem:[%s2721_s5 + $0x28] sm:$0xff]  ;;  %v1431_v26 = vld [vmem:[%s2721_s5 + $0x1d8] sm:$0xff] }
 0x10e   :  { %545 = vmatpush.msrb.mxu1 %v462_v13  ;;  %v1477_v13 = vld [vmem:[%s2725_s8 + $0x1a0] sm:$0xff] }
 0x114   :  { %v160_v15 = vpop.f32.mrf.mxu2  ;;  %v189_v32 = vpop.f32.mrf.mxu3 }
 0x115   :  { %v190_v40 = vadd.f32 %v189_v32, %v160_v15  ;;  %v461_v15 = vld [vmem:[%s2721_s5 + $0x20] sm:$0xff] }
 0x116   :  { %v258_v24 = vpop.f32.mrf.mxu1  ;;  %546 = vmatpush.msrb.mxu1 %v461_v15  ;;  %v1406_v32 = vld [vmem:[%s2721_s5 + $0x120] sm:$0xff] }
 0x117   :  { %v264_v35 = vadd.f32 %v258_v24, %v187_v33  ;;  %v1432_v24 = vld [vmem:[%s2721_s5 + $0x1e0] sm:$0xff]  ;;  %608 = vmatpush.msra.mxu3 %v1406_v32 }
 0x118   :  { %547 = vmatpush.msrb.mxu1 %v460_v20  ;;  %v1428_v33 = vld [vmem:[%s2721_s5 + $0x1c0] sm:$0xff]  ;;  %v1471_v20 = vld [vmem:[%s2725_s8 + $0x170] sm:$0xff] }
 0x119   :  { %v785_v32 = vld [vmem:[%s2725_s8 + $0x20] sm:$0xff] }
 0x11a   :  { %548 = vmatpush.msrb.mxu1 %v459_v21  ;;  %v795_v21 = vld [vmem:[%s2725_s8 + $0x70] sm:$0xff] }
 0x11c   :  { %v292_v16 = vpop.f32.mrf.mxu2  ;;  %549 = vmatpush.msrb.mxu1 %v458_v22  ;;  %v1469_v22 = vld [vmem:[%s2725_s8 + $0x160] sm:$0xff] }
 0x11d   :  { %1363 = vmatmul.msk.f32.vlgmr.msrb.gmra.mxu3 %vm133_vm1, %v292_v16  ;;  %v1435_v16 = vld [vmem:[%s2721_s5 + $0x1f8] sm:$0xff] }
 0x11e   :  { %v261_v31 = vpop.f32.mrf.mxu1  ;;  %550 = vmatpush.msrb.mxu1 %v457_v29  ;;  %v1463_v29 = vld [vmem:[%s2725_s8 + $0x130] sm:$0xff] }
 0x11f   :  { %v265_v41 = vadd.f32 %v261_v31, %v190_v40  ;;  %v1429_v31 = vld [vmem:[%s2721_s5 + $0x1c8] sm:$0xff]  ;;  %v1402_v40 = vld [vmem:[%s2721_s5 + $0x100] sm:$0xff] }
 0x120   :  { %871 = vmatpush.msra.mxu1 %v1487_v3  ;;  %v1466_v3 = vld [vmem:[%s2725_s8 + $0x148] sm:$0xff] }
 0x122   :  { %872 = vmatpush.msra.mxu1 %v1485_v5  ;;  %v1464_v5 = vld [vmem:[%s2725_s8 + $0x138] sm:$0xff] }
 0x124   :  { %v295_v17 = vpop.f32.mrf.mxu2  ;;  %873 = vmatpush.msra.mxu1 %v1483_v7  ;;  %v1462_v7 = vld [vmem:[%s2725_s8 + $0x128] sm:$0xff] }
 0x125   :  { %1364 = vmatmul.msk.f32.gmra.mxu3 %vm133_vm1, %v295_v17  ;;  %v1434_v17 = vld [vmem:[%s2721_s5 + $0x1f0] sm:$0xff] }
 0x126   :  { %v406_v34 = vpop.f32.mrf.mxu1  ;;  %874 = vmatpush.msra.mxu1 %v1481_v9  ;;  %v1460_v9 = vld [vmem:[%s2725_s8 + $0x118] sm:$0xff] }
 0x128   :  { %875 = vmatpush.msra.mxu1 %v1479_v11  ;;  %v1521_v11 = vld [vmem:[%s2725_s8 + $0x2f0] sm:$0xff] }
 0x12a   :  { %876 = vmatpush.msra.mxu1 %v1477_v13  ;;  %v1517_v13 = vld [vmem:[%s2725_s8 + $0x2d0] sm:$0xff] }
 0x12e   :  { %v409_v44 = vpop.f32.mrf.mxu1 }
 0x1a0   :  { %v332_v36 = vpop.f32.mrf.mxu3 }
 0x1a1   :  { %v338_v37 = vadd.f32 %v332_v36, %v264_v35  ;;  %v1427_v35 = vld [vmem:[%s2721_s5 + $0x1b8] sm:$0xff]  ;;  %v1404_v36 = vld [vmem:[%s2721_s5 + $0x110] sm:$0xff] }
 0x1a3   :  { %v412_v38 = vadd.f32 %v406_v34, %v338_v37  ;;  %v1405_v34 = vld [vmem:[%s2721_s5 + $0x118] sm:$0xff]  ;;  %v1426_v37 = vld [vmem:[%s2721_s5 + $0x1b0] sm:$0xff] }
 0x1a4   :  { %609 = vmatpush.msra.mxu3 %v1405_v34  ;;  %v783_v34 = vld [vmem:[%s2725_s8 + $0x10] sm:$0xff] }
 0x1a5   :  { %v416_v42 = vadd.f32 %v1593_v39, %v412_v38  ;;  %v1403_v38 = vld [vmem:[%s2721_s5 + $0x108] sm:$0xff] }
 0x1a6   :  { %610 = vmatpush.msra.mxu3 %v1404_v36  ;;  %v781_v36 = vld [vmem:[%s2725_s8] sm:$0xff] }
 0x1a7   :  { %v420_v46 = vmul.f32 0.2, %v416_v42  ;;  %vm418_vm2 = vcmp.ge.f32.partialorder %v416_v42, 0.0 }
 0x1a8   :  { %v335_v43 = vpop.f32.mrf.mxu3  ;;  %611 = vmatpush.msra.mxu3 %v1403_v38 }
 0x1a9   :  { %v339_v45 = vadd.f32 %v335_v43, %v265_v41  ;;  %v422_v50 = vsel %vm418_vm2, %v416_v42, %v420_v46  ;;  %v1424_v41 = vld [vmem:[%s2721_s5 + $0x1a0] sm:$0xff]  ;;  %v1423_v42 = vld [vmem:[%s2721_s5 + $0x198] sm:$0xff]  ;;  %v1422_v43 = vld [vmem:[%s2721_s5 + $0x190] sm:$0xff] }
 0x1aa   :  { %v426_v55 = vmul.f32 %v1594_v49, %v422_v50  ;;  %612 = vmatpush.msra.mxu3 %v1402_v40  ;;  %v1451_v50 = vld [vmem:[%s2721_s5 + $0x268] sm:$0xff] }
 0x1ab   :  { %v413_v47 = vadd.f32 %v409_v44, %v339_v45  ;;  %v1421_v44 = vld [vmem:[%s2721_s5 + $0x188] sm:$0xff]  ;;  %v1420_v45 = vld [vmem:[%s2721_s5 + $0x180] sm:$0xff] }
 0x1ac   :  { %v430_v62 = vadd.f32 %v1595_v56, %v426_v55  ;;  %v1448_v55 = vld [vmem:[%s2721_s5 + $0x250] sm:$0xff] }
 0x1ad   :  { %v417_v48 = vadd.f32 %v1593_v39, %v413_v47  ;;  %v1425_v39 = vld [vmem:[%s2721_s5 + $0x1a8] sm:$0xff]  ;;  %v1453_v47 = vld [vmem:[%s2721_s5 + $0x278] sm:$0xff] }
 0x1af   :  { %vm419_vm3 = vcmp.ge.f32.partialorder %v417_v48, 0.0  ;;  %v421_v51 = vmul.f32 0.2, %v417_v48 }
 0x1b1   :  { %v423_v52 = vsel %vm419_vm3, %v417_v48, %v421_v51  ;;  %v1450_v51 = vld [vmem:[%s2721_s5 + $0x260] sm:$0xff] }
 0x1b2   :  { %v427_v57 = vmul.f32 %v1594_v49, %v423_v52  ;;  %v1452_v49 = vld [vmem:[%s2721_s5 + $0x270] sm:$0xff]  ;;  %v1436_v52 = vld [vmem:[%s2723_s4 + $0x20] sm:$0xff] }
 0x1b4   :  { %v431_v59 = vadd.f32 %v1595_v56, %v427_v57  ;;  %v1447_v56 = vld [vmem:[%s2721_s5 + $0x248] sm:$0xff]  ;;  %v1446_v57 = vld [vmem:[%s2721_s5 + $0x240] sm:$0xff] }
 0x1b6   :  { %451 = vmatpush.msra.mxu2 %v431_v59  ;;  %700 = vmatpush.msra.mxu0 %v431_v59 }
 0x1b8   :  { %452 = vmatpush.msra.mxu2 %v430_v62  ;;  %701 = vmatpush.msra.mxu0 %v430_v62 }
 0x1b9   :  { %1381 = vmatmul.msk.f32.vlgmr.msra.gmra.mxu2 %vm433_vm4, %v432_v63  ;;  %v1441_v63 = vld [vmem:[%s2721_s5 + $0x218] sm:$0xff] }
 0x1ba   :  { %492 = vmatpush.msrb.mxu2 %v431_v59 }
 0x1bc   :  { %493 = vmatpush.msrb.mxu2 %v430_v62 }
 0x1be   :  { %574 = vmatpush.msra.mxu2 %v431_v59 }
 0x1c0   :  { %575 = vmatpush.msra.mxu2 %v430_v62 }
 0x1c1   :  { %1383 = vmatmul.msk.f32.vlgmr.msrb.gmra.mxu2 %vm433_vm4, %v1382_v8  ;;  %v807_v8 = vld [vmem:[%s2725_s8 + $0xd0] sm:$0xff] }
 0x1c2   :  { %637 = vmatpush.msrb.mxu2 %v431_v59 }
 0x1c4   :  { %638 = vmatpush.msrb.mxu2 %v430_v62  ;;  %v1442_v62 = vld [vmem:[%s2721_s5 + $0x220] sm:$0xff] }
 0x1c9   :  { %1401 = vmatmul.msk.f32.vlgmr.msra.gmra.mxu2 %vm433_vm4, %v1400_v14  ;;  %v801_v14 = vld [vmem:[%s2725_s8 + $0xa0] sm:$0xff] }
 0x1ca   :  { %660 = vmatpush.msra.mxu2 %v1435_v16  ;;  %v1475_v16 = vld [vmem:[%s2725_s8 + $0x190] sm:$0xff] }
 0x1cb   :  { %877 = vmatpush.msra.mxu1 %v1475_v16  ;;  %v1511_v16 = vld [vmem:[%s2725_s8 + $0x2a0] sm:$0xff] }
 0x1cc   :  { %661 = vmatpush.msra.mxu2 %v1434_v17  ;;  %v799_v17 = vld [vmem:[%s2725_s8 + $0x90] sm:$0xff] }
 0x1ce   :  { %662 = vmatpush.msra.mxu2 %v1433_v18  ;;  %v1473_v18 = vld [vmem:[%s2725_s8 + $0x180] sm:$0xff] }
 0x1cf   :  { %878 = vmatpush.msra.mxu1 %v1473_v18  ;;  %v1507_v18 = vld [vmem:[%s2725_s8 + $0x280] sm:$0xff] }
 0x1d0   :  { %663 = vmatpush.msra.mxu2 %v1432_v24 }
 0x1d1   :  { %1419 = vmatmul.msk.f32.vlgmr.msrb.gmra.mxu2 %vm433_vm4, %v1418_v19  ;;  %v797_v19 = vld [vmem:[%s2725_s8 + $0x80] sm:$0xff]  ;;  %879 = vmatpush.msra.mxu1 %v1471_v20 }
 0x1d2   :  { %664 = vmatpush.msra.mxu2 %v1431_v26  ;;  %v791_v26 = vld [vmem:[%s2725_s8 + $0x50] sm:$0xff]  ;;  %v1503_v20 = vld [vmem:[%s2725_s8 + $0x260] sm:$0xff] }
 0x1d3   :  { %880 = vmatpush.msra.mxu1 %v1469_v22  ;;  %v1499_v22 = vld [vmem:[%s2725_s8 + $0x240] sm:$0xff] }
 0x1d4   :  { %665 = vmatpush.msra.mxu2 %v1430_v28  ;;  %v789_v28 = vld [vmem:[%s2725_s8 + $0x40] sm:$0xff] }
 0x1d5   :  { %881 = vmatpush.msra.mxu1 %v1467_v25  ;;  %v802_v25 = vld [vmem:[%s2725_s8 + $0xa8] sm:$0xff] }
 0x1d6   :  { %666 = vmatpush.msra.mxu2 %v1429_v31  ;;  %v1461_v31 = vld [vmem:[%s2725_s8 + $0x120] sm:$0xff] }
 0x1d7   :  { %882 = vmatpush.msra.mxu1 %v1465_v27  ;;  %v798_v27 = vld [vmem:[%s2725_s8 + $0x88] sm:$0xff] }
 0x1d8   :  { %667 = vmatpush.msra.mxu2 %v1428_v33  ;;  %v1459_v33 = vld [vmem:[%s2725_s8 + $0x110] sm:$0xff] }
 0x1d9   :  { %883 = vmatpush.msra.mxu1 %v1463_v29  ;;  %v1495_v29 = vld [vmem:[%s2725_s8 + $0x220] sm:$0xff] }
 0x1da   :  { %668 = vmatpush.msra.mxu2 %v1427_v35  ;;  %v1457_v35 = vld [vmem:[%s2725_s8 + $0x100] sm:$0xff] }
 0x1db   :  { %884 = vmatpush.msra.mxu1 %v1461_v31  ;;  %v1493_v31 = vld [vmem:[%s2725_s8 + $0x210] sm:$0xff] }
 0x1dc   :  { %669 = vmatpush.msra.mxu2 %v1426_v37 }
 0x1dd   :  { %885 = vmatpush.msra.mxu1 %v1459_v33  ;;  %v790_v33 = vld [vmem:[%s2725_s8 + $0x48] sm:$0xff] }
 0x1de   :  { %670 = vmatpush.msra.mxu2 %v1425_v39 }
 0x1df   :  { %886 = vmatpush.msra.mxu1 %v1457_v35  ;;  %v788_v35 = vld [vmem:[%s2725_s8 + $0x38] sm:$0xff] }
 0x1e0   :  { %671 = vmatpush.msra.mxu2 %v1424_v41 }
 0x1e2   :  { %672 = vmatpush.msra.mxu2 %v1423_v42 }
 0x1e4   :  { %673 = vmatpush.msra.mxu2 %v1422_v43  ;;  %v1596_v43 = vld [vmem:[%s2724_s6] ss:$0 sm:$0xff] }
 0x1e6   :  { %674 = vmatpush.msra.mxu2 %v1421_v44 }
 0x1e8   :  { %675 = vmatpush.msra.mxu2 %v1420_v45 }
 0x1ea   :  { %911 = vmatpush.msrb.mxu2 %v811_v4  ;;  %v810_v4 = vld [vmem:[%s2725_s8 + $0xe8] sm:$0xff] }
 0x1ec   :  { %912 = vmatpush.msrb.mxu2 %v809_v6  ;;  %v808_v6 = vld [vmem:[%s2725_s8 + $0xd8] sm:$0xff] }
 0x1ee   :  { %913 = vmatpush.msrb.mxu2 %v807_v8  ;;  %v806_v8 = vld [vmem:[%s2725_s8 + $0xc8] sm:$0xff] }
 0x1f0   :  { %914 = vmatpush.msrb.mxu2 %v805_v10  ;;  %v1458_v10 = vld [vmem:[%s2725_s8 + $0x108] sm:$0xff] }
 0x1f2   :  { %915 = vmatpush.msrb.mxu2 %v803_v12  ;;  %v1519_v12 = vld [vmem:[%s2725_s8 + $0x2e0] sm:$0xff] }
 0x1f4   :  { %916 = vmatpush.msrb.mxu2 %v801_v14  ;;  %v1515_v14 = vld [vmem:[%s2725_s8 + $0x2c0] sm:$0xff] }
 0x1f6   :  { %917 = vmatpush.msrb.mxu2 %v799_v17  ;;  %v1509_v17 = vld [vmem:[%s2725_s8 + $0x290] sm:$0xff] }
 0x1f8   :  { %918 = vmatpush.msrb.mxu2 %v797_v19  ;;  %v1505_v19 = vld [vmem:[%s2725_s8 + $0x270] sm:$0xff] }
 0x1fa   :  { %919 = vmatpush.msrb.mxu2 %v795_v21  ;;  %v1501_v21 = vld [vmem:[%s2725_s8 + $0x250] sm:$0xff] }
 0x1fc   :  { %920 = vmatpush.msrb.mxu2 %v793_v23  ;;  %v1497_v23 = vld [vmem:[%s2725_s8 + $0x230] sm:$0xff] }
 0x1fe   :  { %921 = vmatpush.msrb.mxu2 %v791_v26  ;;  %v800_v26 = vld [vmem:[%s2725_s8 + $0x98] sm:$0xff] }
 0x200   :  { %922 = vmatpush.msrb.mxu2 %v789_v28  ;;  %v796_v28 = vld [vmem:[%s2725_s8 + $0x78] sm:$0xff] }
 0x202   :  { %923 = vmatpush.msrb.mxu2 %v787_v30  ;;  %v794_v30 = vld [vmem:[%s2725_s8 + $0x68] sm:$0xff] }
 0x204   :  { %924 = vmatpush.msrb.mxu2 %v785_v32  ;;  %v792_v32 = vld [vmem:[%s2725_s8 + $0x58] sm:$0xff] }
 0x206   :  { %925 = vmatpush.msrb.mxu2 %v783_v34  ;;  %v1491_v34 = vld [vmem:[%s2725_s8 + $0x200] sm:$0xff] }
 0x208   :  { %926 = vmatpush.msrb.mxu2 %v781_v36  ;;  %v786_v36 = vld [vmem:[%s2725_s8 + $0x28] sm:$0xff] }
 0x23c   :  { %v454_v46 = vpop.f32.mrf.mxu2 }
 0x23d   :  { %551 = vmatmul.f32.vlgmr.msrb.gmra.mxu1 %v454_v46 }
 0x244   :  { %v495_v48 = vpop.f32.mrf.mxu2 }
 0x245   :  { %531 = vmatmul.f32.vlgmr.msrb.gmra.mxu0 %v495_v48 }
 0x246   :  { %723 = vmatpush.msrb.mxu0 %v1453_v47  ;;  %v1597_v47 = vld [vmem:[%s2724_s6 + $0x1] ss:$0 sm:$0xff] }
 0x248   :  { %724 = vmatpush.msrb.mxu0 %v1452_v49  ;;  %v1598_v49 = vld [vmem:[%s2724_s6 + $0x2] ss:$0 sm:$0xff] }
 0x24a   :  { %725 = vmatpush.msrb.mxu0 %v1451_v50 }
 0x24c   :  { %v577_v54 = vpop.f32.mrf.mxu2  ;;  %726 = vmatpush.msrb.mxu0 %v1450_v51 }
 0x24d   :  { %613 = vmatmul.f32.vlgmr.msra.gmra.mxu3 %v577_v54  ;;  %1437 = vmatmul.msk.f32.vlgmr.msra.gmra.mxu0 %vm433_vm4, %v1436_v52  ;;  %v756_v54 = vld [vmem:[%s2726_s7] sm:$0xf] }
 0x24e   :  { %727 = vmatpush.msrb.mxu0 %v1449_v53  ;;  %v1455_v53 = vld [vmem:[%s2726_s7 + $0x4] sm:$0xf] }
 0x250   :  { %728 = vmatpush.msrb.mxu0 %v1448_v55  ;;  %v1488_v55 = vld [vmem:[%s2725_s8 + $0x1f8] sm:$0xff] }
 0x252   :  { %729 = vmatpush.msrb.mxu0 %v1447_v56  ;;  %v1486_v56 = vld [vmem:[%s2725_s8 + $0x1e8] sm:$0xff] }
 0x254   :  { %v640_v59 = vpop.f32.mrf.mxu2  ;;  %730 = vmatpush.msrb.mxu0 %v1446_v57  ;;  %v1484_v57 = vld [vmem:[%s2725_s8 + $0x1d8] sm:$0xff] }
 0x255   :  { %676 = vmatmul.f32.vlgmr.msra.gmra.mxu2 %v640_v59  ;;  %v1480_v59 = vld [vmem:[%s2725_s8 + $0x1b8] sm:$0xff] }
 0x256   :  { %731 = vmatpush.msrb.mxu0 %v1445_v58  ;;  %v1482_v58 = vld [vmem:[%s2725_s8 + $0x1c8] sm:$0xff] }
 0x258   :  { %732 = vmatpush.msrb.mxu0 %v1444_v60  ;;  %v1478_v60 = vld [vmem:[%s2725_s8 + $0x1a8] sm:$0xff] }
 0x25a   :  { %733 = vmatpush.msrb.mxu0 %v1443_v61  ;;  %v1476_v61 = vld [vmem:[%s2725_s8 + $0x198] sm:$0xff] }
 0x25c   :  { %734 = vmatpush.msrb.mxu0 %v1442_v62  ;;  %v1474_v62 = vld [vmem:[%s2725_s8 + $0x188] sm:$0xff] }
 0x25e   :  { %735 = vmatpush.msrb.mxu0 %v1441_v63  ;;  %v1472_v63 = vld [vmem:[%s2725_s8 + $0x178] sm:$0xff] }
 0x260   :  { %736 = vmatpush.msrb.mxu0 %v1440_v0  ;;  %v1470_v0 = vld [vmem:[%s2725_s8 + $0x168] sm:$0xff] }
 0x262   :  { %737 = vmatpush.msrb.mxu0 %v1439_v1  ;;  %v1468_v1 = vld [vmem:[%s2725_s8 + $0x158] sm:$0xff] }
 0x264   :  { %738 = vmatpush.msrb.mxu0 %v1438_v2  ;;  %v812_v2 = vld [vmem:[%s2725_s8 + $0xf8] sm:$0xff] }
 0x2ba   :  { %v552_v37 = vpop.f32.mrf.mxu1 }
 0x2c2   :  { %v532_v15 = vpop.f32.mrf.mxu0 }
 0x2c3   :  { %v553_v39 = vadd.f32 %v552_v37, %v532_v15  ;;  %v1513_v15 = vld [vmem:[%s2725_s8 + $0x2b0] sm:$0xff]  ;;  %v784_v37 = vld [vmem:[%s2725_s8 + $0x18] sm:$0xff] }
 0x2ca   :  { %v703_v24 = vpop.f32.mrf.mxu0 }
 0x2cb   :  { %739 = vmatmul.f32.vlgmr.msrb.gmra.mxu0 %v703_v24  ;;  %v804_v24 = vld [vmem:[%s2725_s8 + $0xb8] sm:$0xff] }
 0x2d0   :  { %v614_v38 = vpop.f32.mrf.mxu3 }
 0x2d1   :  { %v617_v41 = vadd.f32 %v614_v38, %v553_v39  ;;  %v782_v38 = vld [vmem:[%s2725_s8 + $0x8] sm:$0xff]  ;;  %v1556_v39 = vld [vmem:[%s2725_s8 + $0x3f8] sm:$0xff] }
 0x2d8   :  { %v677_v40 = vpop.f32.mrf.mxu2 }
 0x2d9   :  { %v680_v42 = vadd.f32 %v677_v40, %v617_v41  ;;  %v1554_v40 = vld [vmem:[%s2725_s8 + $0x3e8] sm:$0xff]  ;;  %v1552_v41 = vld [vmem:[%s2725_s8 + $0x3d8] sm:$0xff] }
 0x348   :  { %v740_v44 = vpop.f32.mrf.mxu0 }
 0x349   :  { %v743_v45 = vadd.f32 %v740_v44, %v680_v42  ;;  %v1550_v42 = vld [vmem:[%s2725_s8 + $0x3c8] sm:$0xff] }
 0x34a   :  { %v1546_v44 = vld [vmem:[%s2725_s8 + $0x3a8] sm:$0xff] }
 0x34b   :  { %v746_v46 = vadd.f32 %v1596_v43, %v743_v45  ;;  %v1548_v43 = vld [vmem:[%s2725_s8 + $0x3b8] sm:$0xff] }
 0x34c   :  { %v1544_v45 = vld [vmem:[%s2725_s8 + $0x398] sm:$0xff] }
 0x34d   :  { %vm747_vm5 = vcmp.ge.f32.partialorder %v746_v46, 0.0  ;;  %v748_v48 = vmul.f32 0.2, %v746_v46 }
 0x34f   :  { %v749_v50 = vsel %vm747_vm5, %v746_v46, %v748_v48  ;;  %v1542_v46 = vld [vmem:[%s2725_s8 + $0x388] sm:$0xff]  ;;  %v1540_v48 = vld [vmem:[%s2725_s8 + $0x378] sm:$0xff] }
 0x350   :  { %v752_v51 = vmul.f32 %v1597_v47, %v749_v50  ;;  %v1555_v47 = vld [vmem:[%s2725_s8 + $0x3f0] sm:$0xff]  ;;  %v1553_v50 = vld [vmem:[%s2725_s8 + $0x3e0] sm:$0xff] }
 0x352   :  { %v2289_v52 = vadd.f32 %v1598_v49, %v752_v51  ;;  %v1538_v51 = vld [vmem:[%s2725_s8 + $0x368] sm:$0xff] }
 0x354   :  { %776 = vmatpush.msra.mxu0 %v2289_v52  ;;  %833 = vmatpush.msrb.mxu3 %v2289_v52 }
 0x355   :  { %971 = vmatpush.msrb.mxu1 %v2289_v52  ;;  %1071 = vmatpush.msra.mxu2 %v2289_v52 }
 0x356   :  { %1456 = vmatmul.msk.f32.vlgmr.msrb.gmra.mxu3 %vm757_vm6, %v1455_v53  ;;  %1454 = vmatmul.msk.f32.vlgmr.msra.gmra.mxu0 %vm757_vm6, %v756_v54  ;;  %v1551_v53 = vld [vmem:[%s2725_s8 + $0x3d0] sm:$0xff]  ;;  %v1522_v54 = vld [vmem:[%s2725_s8 + $0x2f8] sm:$0xff] }
 0x357   :  { %891 = vmatpush.msra.mxu3 %v1488_v55  ;;  %931 = vmatpush.msrb.mxu0 %v812_v2  ;;  %v1541_v2 = vld [vmem:[%s2725_s8 + $0x380] sm:$0xff] }
 0x359   :  { %892 = vmatpush.msra.mxu3 %v1486_v56  ;;  %932 = vmatpush.msrb.mxu0 %v810_v4  ;;  %v1523_v56 = vld [vmem:[%s2726_s7 + $0xc] sm:$0xf]  ;;  %v1539_v4 = vld [vmem:[%s2725_s8 + $0x370] sm:$0xff] }
 0x35b   :  { %893 = vmatpush.msra.mxu3 %v1484_v57  ;;  %933 = vmatpush.msrb.mxu0 %v808_v6  ;;  %v1520_v57 = vld [vmem:[%s2725_s8 + $0x2e8] sm:$0xff]  ;;  %v1537_v6 = vld [vmem:[%s2725_s8 + $0x360] sm:$0xff] }
 0x35d   :  { %894 = vmatpush.msra.mxu3 %v1482_v58  ;;  %934 = vmatpush.msrb.mxu0 %v806_v8  ;;  %v1549_v58 = vld [vmem:[%s2725_s8 + $0x3c0] sm:$0xff]  ;;  %v1504_v8 = vld [vmem:[%s2725_s8 + $0x268] sm:$0xff] }
 0x35f   :  { %895 = vmatpush.msra.mxu3 %v1480_v59  ;;  %935 = vmatpush.msrb.mxu0 %v804_v24  ;;  %v1518_v59 = vld [vmem:[%s2725_s8 + $0x2d8] sm:$0xff] }
 0x360   :  { %v1528_v24 = vld [vmem:[%s2725_s8 + $0x318] sm:$0xff] }
 0x361   :  { %896 = vmatpush.msra.mxu3 %v1478_v60  ;;  %936 = vmatpush.msrb.mxu0 %v802_v25  ;;  %v1547_v60 = vld [vmem:[%s2725_s8 + $0x3b0] sm:$0xff]  ;;  %v1525_v25 = vld [vmem:[%s2725_s8 + $0x300] sm:$0xff] }
 0x363   :  { %897 = vmatpush.msra.mxu3 %v1476_v61  ;;  %937 = vmatpush.msrb.mxu0 %v800_v26  ;;  %v1516_v61 = vld [vmem:[%s2725_s8 + $0x2c8] sm:$0xff] }
 0x364   :  { %v1526_v26 = vld [vmem:[%s2725_s8 + $0x308] sm:$0xff] }
 0x365   :  { %898 = vmatpush.msra.mxu3 %v1474_v62  ;;  %938 = vmatpush.msrb.mxu0 %v798_v27  ;;  %v1489_v62 = vld [vmem:[%s2726_s7 + $0x8] sm:$0xf]  ;;  %v1589_v27 = vld [vmem:[%s2725_s8 + $0x4f0] sm:$0xff] }
 0x367   :  { %899 = vmatpush.msra.mxu3 %v1472_v63  ;;  %939 = vmatpush.msrb.mxu0 %v796_v28  ;;  %v1514_v63 = vld [vmem:[%s2725_s8 + $0x2b8] sm:$0xff]  ;;  %v1587_v28 = vld [vmem:[%s2725_s8 + $0x4e0] sm:$0xff] }
 0x369   :  { %900 = vmatpush.msra.mxu3 %v1470_v0  ;;  %940 = vmatpush.msrb.mxu0 %v794_v30  ;;  %v1543_v0 = vld [vmem:[%s2725_s8 + $0x390] sm:$0xff]  ;;  %v1583_v30 = vld [vmem:[%s2725_s8 + $0x4c0] sm:$0xff] }
 0x36b   :  { %901 = vmatpush.msra.mxu3 %v1468_v1  ;;  %941 = vmatpush.msrb.mxu0 %v792_v32  ;;  %v1512_v1 = vld [vmem:[%s2725_s8 + $0x2a8] sm:$0xff]  ;;  %v1579_v32 = vld [vmem:[%s2725_s8 + $0x4a0] sm:$0xff] }
 0x36d   :  { %902 = vmatpush.msra.mxu3 %v1466_v3  ;;  %942 = vmatpush.msrb.mxu0 %v790_v33  ;;  %v1510_v3 = vld [vmem:[%s2725_s8 + $0x298] sm:$0xff]  ;;  %v1577_v33 = vld [vmem:[%s2725_s8 + $0x490] sm:$0xff] }
 0x36f   :  { %903 = vmatpush.msra.mxu3 %v1464_v5  ;;  %943 = vmatpush.msrb.mxu0 %v788_v35  ;;  %v1508_v5 = vld [vmem:[%s2725_s8 + $0x288] sm:$0xff] }
 0x371   :  { %904 = vmatpush.msra.mxu3 %v1462_v7  ;;  %944 = vmatpush.msrb.mxu0 %v786_v36  ;;  %v1506_v7 = vld [vmem:[%s2725_s8 + $0x278] sm:$0xff] }
 0x373   :  { %905 = vmatpush.msra.mxu3 %v1460_v9  ;;  %945 = vmatpush.msrb.mxu0 %v784_v37  ;;  %v1502_v9 = vld [vmem:[%s2725_s8 + $0x258] sm:$0xff] }
 0x375   :  { %906 = vmatpush.msra.mxu3 %v1458_v10  ;;  %946 = vmatpush.msrb.mxu0 %v782_v38  ;;  %v1500_v10 = vld [vmem:[%s2725_s8 + $0x248] sm:$0xff] }
 0x377   :  { %1009 = vmatpush.msrb.mxu3 %v1521_v11  ;;  %1129 = vmatpush.msra.mxu0 %v1556_v39  ;;  %v1535_v11 = vld [vmem:[%s2725_s8 + $0x350] sm:$0xff] }
 0x379   :  { %1010 = vmatpush.msrb.mxu3 %v1519_v12  ;;  %1130 = vmatpush.msra.mxu0 %v1554_v40  ;;  %v1536_v12 = vld [vmem:[%s2725_s8 + $0x358] sm:$0xff] }
 0x37a   :  { %v1590_v40 = vld [vmem:[%s2725_s8 + $0x4f8] sm:$0xff] }
 0x37b   :  { %1011 = vmatpush.msrb.mxu3 %v1517_v13  ;;  %1131 = vmatpush.msra.mxu0 %v1552_v41  ;;  %v1498_v13 = vld [vmem:[%s2725_s8 + $0x238] sm:$0xff]  ;;  %v1588_v41 = vld [vmem:[%s2725_s8 + $0x4e8] sm:$0xff] }
 0x37d   :  { %1012 = vmatpush.msrb.mxu3 %v1515_v14  ;;  %1132 = vmatpush.msra.mxu0 %v1550_v42  ;;  %v1533_v14 = vld [vmem:[%s2725_s8 + $0x340] sm:$0xff]  ;;  %v1586_v42 = vld [vmem:[%s2725_s8 + $0x4d8] sm:$0xff] }
 0x37f   :  { %1013 = vmatpush.msrb.mxu3 %v1513_v15  ;;  %1133 = vmatpush.msra.mxu0 %v1548_v43  ;;  %v1534_v15 = vld [vmem:[%s2725_s8 + $0x348] sm:$0xff]  ;;  %v1557_v43 = vld [vmem:[%s2726_s7 + $0x10] sm:$0xf] }
 0x381   :  { %1014 = vmatpush.msrb.mxu3 %v1511_v16  ;;  %1134 = vmatpush.msra.mxu0 %v1546_v44  ;;  %v1496_v16 = vld [vmem:[%s2725_s8 + $0x228] sm:$0xff] }
 0x382   :  { %v1584_v44 = vld [vmem:[%s2725_s8 + $0x4c8] sm:$0xff] }
 0x383   :  { %1015 = vmatpush.msrb.mxu3 %v1509_v17  ;;  %1135 = vmatpush.msra.mxu0 %v1544_v45  ;;  %v1531_v17 = vld [vmem:[%s2725_s8 + $0x330] sm:$0xff]  ;;  %v1582_v45 = vld [vmem:[%s2725_s8 + $0x4b8] sm:$0xff] }
 0x385   :  { %1016 = vmatpush.msrb.mxu3 %v1507_v18  ;;  %1136 = vmatpush.msra.mxu0 %v1542_v46  ;;  %v1532_v18 = vld [vmem:[%s2725_s8 + $0x338] sm:$0xff]  ;;  %v1580_v46 = vld [vmem:[%s2725_s8 + $0x4a8] sm:$0xff] }
 0x387   :  { %1017 = vmatpush.msrb.mxu3 %v1505_v19  ;;  %1137 = vmatpush.msra.mxu0 %v1540_v48  ;;  %v1494_v19 = vld [vmem:[%s2725_s8 + $0x218] sm:$0xff]  ;;  %v1576_v48 = vld [vmem:[%s2725_s8 + $0x488] sm:$0xff] }
 0x389   :  { %1018 = vmatpush.msrb.mxu3 %v1503_v20  ;;  %1138 = vmatpush.msra.mxu0 %v1538_v51  ;;  %v1529_v20 = vld [vmem:[%s2725_s8 + $0x320] sm:$0xff] }
 0x38a   :  { %v1571_v51 = vld [vmem:[%s2725_s8 + $0x460] sm:$0xff] }
 0x38b   :  { %1019 = vmatpush.msrb.mxu3 %v1501_v21  ;;  %1139 = vmatpush.msra.mxu0 %v1536_v12  ;;  %v1530_v21 = vld [vmem:[%s2725_s8 + $0x328] sm:$0xff] }
 0x38d   :  { %1020 = vmatpush.msrb.mxu3 %v1499_v22  ;;  %1140 = vmatpush.msra.mxu0 %v1534_v15  ;;  %v1492_v22 = vld [vmem:[%s2725_s8 + $0x208] sm:$0xff] }
 0x38f   :  { %1021 = vmatpush.msrb.mxu3 %v1497_v23  ;;  %1141 = vmatpush.msra.mxu0 %v1532_v18  ;;  %v1527_v23 = vld [vmem:[%s2725_s8 + $0x310] sm:$0xff] }
 0x391   :  { %1022 = vmatpush.msrb.mxu3 %v1495_v29  ;;  %1142 = vmatpush.msra.mxu0 %v1530_v21  ;;  %v1585_v29 = vld [vmem:[%s2725_s8 + $0x4d0] sm:$0xff] }
 0x393   :  { %1023 = vmatpush.msrb.mxu3 %v1493_v31  ;;  %1143 = vmatpush.msra.mxu0 %v1528_v24  ;;  %v1581_v31 = vld [vmem:[%s2725_s8 + $0x4b0] sm:$0xff]  ;;  %v1592_v24 = vld [vmem:[%s2729_s9 + $0x2] ss:$4 sm:$0x3] }
 0x395   :  { %1024 = vmatpush.msrb.mxu3 %v1491_v34  ;;  %1144 = vmatpush.msra.mxu0 %v1526_v26  ;;  %v1575_v34 = vld [vmem:[%s2725_s8 + $0x480] sm:$0xff] }
 0x3d3   :  { %v778_v49 = vpop.f32.mrf.mxu0 }
 0x3d4   :  { %927 = vmatmul.f32.vlgmr.msrb.gmra.mxu2 %v778_v49  ;;  %947 = vmatmul.f32.vlgmr.msrb.gmra.mxu0 %v778_v49  ;;  %v1573_v49 = vld [vmem:[%s2725_s8 + $0x470] sm:$0xff] }
 0x3d5   :  { %1109 = vmatpush.msrb.mxu2 %v1555_v47  ;;  %v1578_v47 = vld [vmem:[%s2725_s8 + $0x498] sm:$0xff] }
 0x3d7   :  { %1110 = vmatpush.msrb.mxu2 %v1553_v50  ;;  %v1574_v50 = vld [vmem:[%s2725_s8 + $0x478] sm:$0xff] }
 0x3d9   :  { %v835_v55 = vpop.f32.mrf.mxu3  ;;  %1111 = vmatpush.msrb.mxu2 %v1551_v53  ;;  %v1572_v53 = vld [vmem:[%s2725_s8 + $0x468] sm:$0xff] }
 0x3da   :  { %887 = vmatmul.f32.vlgmr.msra.gmra.mxu1 %v835_v55  ;;  %907 = vmatmul.f32.vlgmr.msra.gmra.mxu3 %v835_v55  ;;  %v1570_v55 = vld [vmem:[%s2725_s8 + $0x458] sm:$0xff] }
 0x3db   :  { %1171 = vmatpush.msra.mxu3 %v2289_v52  ;;  %1029 = vmatpush.msra.mxu1 %v1522_v54  ;;  %v1545_v52 = vld [vmem:[%s2725_s8 + $0x3a0] sm:$0xff]  ;;  %v1569_v54 = vld [vmem:[%s2725_s8 + $0x450] sm:$0xff] }
 0x3dc   :  { %1524 = vmatmul.msk.f32.vlgmr.msra.gmra.mxu2 %vm757_vm6, %v1523_v56  ;;  %v1567_v56 = vld [vmem:[%s2725_s8 + $0x440] sm:$0xff] }
 0x3dd   :  { %1030 = vmatpush.msra.mxu1 %v1520_v57  ;;  %1112 = vmatpush.msrb.mxu2 %v1549_v58  ;;  %v1568_v57 = vld [vmem:[%s2725_s8 + $0x448] sm:$0xff]  ;;  %v1565_v58 = vld [vmem:[%s2725_s8 + $0x430] sm:$0xff] }
 0x3df   :  { %1031 = vmatpush.msra.mxu1 %v1518_v59  ;;  %1113 = vmatpush.msrb.mxu2 %v1547_v60  ;;  %v1566_v59 = vld [vmem:[%s2725_s8 + $0x438] sm:$0xff]  ;;  %v1563_v60 = vld [vmem:[%s2725_s8 + $0x420] sm:$0xff] }
 0x3e1   :  { %1032 = vmatpush.msra.mxu1 %v1516_v61  ;;  %1114 = vmatpush.msrb.mxu2 %v1545_v52  ;;  %v1564_v61 = vld [vmem:[%s2725_s8 + $0x428] sm:$0xff]  ;;  %v1561_v52 = vld [vmem:[%s2725_s8 + $0x410] sm:$0xff] }
 0x3e2   :  { %1490 = vmatmul.msk.f32.vlgmr.msrb.gmra.mxu1 %vm757_vm6, %v1489_v62  ;;  %v1562_v62 = vld [vmem:[%s2725_s8 + $0x418] sm:$0xff] }
 0x3e3   :  { %1033 = vmatpush.msra.mxu1 %v1514_v63  ;;  %1115 = vmatpush.msrb.mxu2 %v1543_v0  ;;  %v1559_v63 = vld [vmem:[%s2725_s8 + $0x400] sm:$0xff]  ;;  %v1560_v0 = vld [vmem:[%s2725_s8 + $0x408] sm:$0xff] }
 0x3e5   :  { %1034 = vmatpush.msra.mxu1 %v1512_v1  ;;  %1116 = vmatpush.msrb.mxu2 %v1541_v2 }
 0x3e7   :  { %1035 = vmatpush.msra.mxu1 %v1510_v3  ;;  %1117 = vmatpush.msrb.mxu2 %v1539_v4 }
 0x3e9   :  { %1036 = vmatpush.msra.mxu1 %v1508_v5  ;;  %1118 = vmatpush.msrb.mxu2 %v1537_v6  ;;  %v1283_v5 = vld [vmem:[%s2727_s10] sm:$0xff]  ;;  %v17_v6 = vstv %s2728_s11 }
 0x3ea   :  { %1285 = vst [vmem:[#allocation1] ss:$2 sm:$0xff] %v1283_v5 }
 0x3eb   :  { %1037 = vmatpush.msra.mxu1 %v1506_v7  ;;  %1119 = vmatpush.msrb.mxu2 %v1535_v11  ;;  %18 = vst [vmem:[#allocation2] sm:$0x1] %v17_v6 }
 0x3ed   :  { %1038 = vmatpush.msra.mxu1 %v1504_v8  ;;  %1120 = vmatpush.msrb.mxu2 %v1533_v14 }
 0x3ef   :  { %1039 = vmatpush.msra.mxu1 %v1502_v9  ;;  %1121 = vmatpush.msrb.mxu2 %v1531_v17  ;;  %v1591_v17 = vld [vmem:[%s2729_s9 + $0x1] ss:$4 sm:$0x3] }
 0x3f0   :  { %v1268_v21 = vperm.slane %v1591_v17, 0 }
 0x3f1   :  { %1040 = vmatpush.msra.mxu1 %v1500_v10  ;;  %1122 = vmatpush.msrb.mxu2 %v1529_v20  ;;  %v1251_v10 = vld [vmem:[%s2729_s9] ss:$4 sm:$0x3] }
 0x3f2   :  { %v1254_v20 = vperm.slane %v1251_v10, 1 }
 0x3f3   :  { %1041 = vmatpush.msra.mxu1 %v1498_v13  ;;  %1123 = vmatpush.msrb.mxu2 %v1527_v23  ;;  %v1253_v13 = vperm.slane %v1251_v10, 0 }
 0x3f5   :  { %1042 = vmatpush.msra.mxu1 %v1496_v16  ;;  %1124 = vmatpush.msrb.mxu2 %v1525_v25 }
 0x3f7   :  { %1043 = vmatpush.msra.mxu1 %v1494_v19 }
 0x3f9   :  { %1044 = vmatpush.msra.mxu1 %v1492_v22 }
 0x3fb   :  { %1209 = vmatpush.msrb.mxu1 %v1589_v27 }
 0x3fd   :  { %1210 = vmatpush.msrb.mxu1 %v1587_v28 }
 0x3ff   :  { %1211 = vmatpush.msrb.mxu1 %v1585_v29  ;;  %v1277_v29 = vperm.slane %v1592_v24, 0 }
 0x401   :  { %1212 = vmatpush.msrb.mxu1 %v1583_v30 }
 0x403   :  { %1213 = vmatpush.msrb.mxu1 %v1581_v31  ;;  %v1269_v31 = vperm.slane %v1591_v17, 1 }
 0x405   :  { %1214 = vmatpush.msrb.mxu1 %v1579_v32 }
 0x407   :  { %1215 = vmatpush.msrb.mxu1 %v1577_v33  ;;  %v1278_v33 = vperm.slane %v1592_v24, 1 }
 0x409   :  { %1216 = vmatpush.msrb.mxu1 %v1575_v34 }
 0x40b   :  { %1217 = vmatpush.msrb.mxu1 %v1573_v49 }
 0x40d   :  { %1218 = vmatpush.msrb.mxu1 %v1571_v51 }
 0x40f   :  { %1219 = vmatpush.msrb.mxu1 %v1569_v54 }
 0x411   :  { %1220 = vmatpush.msrb.mxu1 %v1567_v56 }
 0x413   :  { %1221 = vmatpush.msrb.mxu1 %v1565_v58 }
 0x415   :  { %1222 = vmatpush.msrb.mxu1 %v1563_v60 }
 0x417   :  { %1223 = vmatpush.msrb.mxu1 %v1561_v52 }
 0x419   :  { %1224 = vmatpush.msrb.mxu1 %v1559_v63 }
 0x451   :  { %v948_v8 = vpop.f32.mrf.mxu0 }
 0x457   :  { %v888_v35 = vpop.f32.mrf.mxu1  ;;  %v928_v36 = vpop.f32.mrf.mxu2 }
 0x458   :  { %v929_v37 = vadd.f32 %v928_v36, %v888_v35  ;;  %v1286_v36 = vld.sshfl [vmem:[#allocation1] sm:$0xff pattern:$0x75316420] }
 0x45d   :  { %v908_v1 = vpop.f32.mrf.mxu3 }
 0x45e   :  { %v949_v11 = vadd.f32 %v948_v8, %v908_v1 }
 0x45f   :  { %v973_v38 = vpop.f32.mrf.mxu1  ;;  %v1073_v39 = vpop.f32.mrf.mxu2 }
 0x460   :  { %1025 = vmatmul.f32.vlgmr.msrb.gmra.mxu3 %v973_v38  ;;  %1045 = vmatmul.f32.vlgmr.msra.gmra.mxu1 %v973_v38  ;;  %v1287_v38 = vld.sshfl [vmem:[#allocation1 + $0x8] sm:$0xff pattern:$0x75316420] }
 0x461   :  { %1125 = vmatmul.f32.vlgmr.msrb.gmra.mxu2 %v1073_v39  ;;  %1145 = vmatmul.f32.vlgmr.msra.gmra.mxu0 %v1073_v39 }
 0x462   :  { %1229 = vmatpush.msrb.mxu3 %v1590_v40 }
 0x464   :  { %1230 = vmatpush.msrb.mxu3 %v1588_v41 }
 0x466   :  { %1231 = vmatpush.msrb.mxu3 %v1586_v42 }
 0x468   :  { %1558 = vmatmul.msk.f32.vlgmr.msra.gmra.mxu3 %vm757_vm6, %v1557_v43 }
 0x469   :  { %1232 = vmatpush.msrb.mxu3 %v1584_v44 }
 0x46b   :  { %1233 = vmatpush.msrb.mxu3 %v1582_v45 }
 0x46d   :  { %1234 = vmatpush.msrb.mxu3 %v1580_v46 }
 0x46f   :  { %1235 = vmatpush.msrb.mxu3 %v1578_v47  ;;  %v1599_v47 = vld [vmem:[#allocation2] ss:$0 sm:$0xff] }
 0x471   :  { %1236 = vmatpush.msrb.mxu3 %v1576_v48 }
 0x473   :  { %1237 = vmatpush.msrb.mxu3 %v1574_v50 }
 0x475   :  { %1238 = vmatpush.msrb.mxu3 %v1572_v53 }
 0x477   :  { %1239 = vmatpush.msrb.mxu3 %v1570_v55 }
 0x479   :  { %1240 = vmatpush.msrb.mxu3 %v1568_v57 }
 0x47b   :  { %1241 = vmatpush.msrb.mxu3 %v1566_v59 }
 0x47d   :  { %1242 = vmatpush.msrb.mxu3 %v1564_v61 }
 0x47f   :  { %1243 = vmatpush.msrb.mxu3 %v1562_v62 }
 0x481   :  { %1244 = vmatpush.msrb.mxu3 %v1560_v0 }
 0x4dd   :  { %v1046_v7 = vpop.f32.mrf.mxu1 }
 0x4de   :  { %v1050_v15 = vadd.f32 %v1046_v7, %v949_v11  ;;  %v1146_v18 = vpop.f32.mrf.mxu0 }
 0x4e0   :  { %v1150_v22 = vadd.f32 %v1146_v18, %v1050_v15 }
 0x4e3   :  { %v1026_v2 = vpop.f32.mrf.mxu3 }
 0x4e4   :  { %v1049_v3 = vadd.f32 %v1026_v2, %v929_v37  ;;  %v1126_v9 = vpop.f32.mrf.mxu2 }
 0x4e6   :  { %v1149_v12 = vadd.f32 %v1126_v9, %v1049_v3 }
 0x4eb   :  { %v1173_v4 = vpop.f32.mrf.mxu3 }
 0x4ec   :  { %1225 = vmatmul.f32.vlgmr.msrb.gmra.mxu1 %v1173_v4  ;;  %1245 = vmatmul.f32.vlgmr.msrb.gmra.mxu3 %v1173_v4 }
 0x569   :  { %v1226_v14 = vpop.f32.mrf.mxu1 }
 0x56a   :  { %v1249_v16 = vadd.f32 %v1226_v14, %v1149_v12 }
 0x56c   :  { %v1257_v19 = vadd.f32 %v1253_v13, %v1249_v16 }
 0x56e   :  { %vm1259_vm7 = vcmp.ge.f32.partialorder %v1257_v19, 0.0  ;;  %v1261_v23 = vmul.f32 0.2, %v1257_v19 }
 0x56f   :  { %v1246_v25 = vpop.f32.mrf.mxu3 }
 0x570   :  { %v1263_v26 = vsel %vm1259_vm7, %v1257_v19, %v1261_v23  ;;  %v1250_v27 = vadd.f32 %v1246_v25, %v1150_v22 }
 0x571   :  { %v1272_v28 = vmul.f32 %v1268_v21, %v1263_v26 }
 0x572   :  { %v1258_v30 = vadd.f32 %v1254_v20, %v1250_v27 }
 0x573   :  { %v1281_v34 = vadd.f32 %v1277_v29, %v1272_v28 }
 0x574   :  { %vm1260_vm8 = vcmp.ge.f32.partialorder %v1258_v30, 0.0  ;;  %v1262_v32 = vmul.f32 0.2, %v1258_v30 }
 0x575   :  { %v1290_v40 = vmul.f32 %v1286_v36, %v1281_v34 }
 0x576   :  { %v1264_v35 = vsel %vm1260_vm8, %v1258_v30, %v1262_v32 }
 0x577   :  { %v1273_v37 = vmul.f32 %v1269_v31, %v1264_v35  ;;  %v1293_v42 = vsel %vm1292_vm9, %v1290_v40, 0.0 }
 0x579   :  { %v1282_v39 = vadd.f32 %v1278_v33, %v1273_v37 }
 0x57b   :  { %v1291_v41 = vmul.f32 %v1287_v38, %v1282_v39 }
 0x57d   :  { %v1294_v43 = vsel %vm1292_vm9, %v1291_v41, 0.0 }
 0x57e   :  { %v1295_v44 = vadd.f32 %v1294_v43, %v1293_v42 }
 0x580   :  { %1296 = vadd.xlane.f32.xlu0 %v1295_v44 }
 0x5f3   :  { %v1297_v45 = vpop.xlane.xlu0 %1296 }
 0x5f4   :  { %v1299_v46 = vrot.slane %v1297_v45, 2 }
 0x5f6   :  { %v1301_v48 = vadd.f32 %v1299_v46, %v1297_v45 }
 0x5f8   :  { %v1306_v49 = vadd.f32 %v1599_v47, %v1301_v48 }
 0x5fa   :  { %1308 = vst.msk [vmem:[%s2730_s12] sm:$0x3] %vm1307_vm10, %v1306_v49 }

</bundles_post_ra>
